<compile_context>
chip_gen: v6e
topology: v6e:2x2x1
jax: 0.10.0
libtpu: 0.0.40
codegen_flags: <defaults>
</compile_context>

<pallas_src>
import functools

import jax
import jax.numpy as jnp
from jax import lax
from jax.experimental import pallas as pl
from jax.experimental.pallas import tpu as pltpu


def _round_up(v, m):
    return ((v + m - 1) // m) * m


# ----------------------------------------------------------------------------
# Tiled matmul kernel: o = [relu?]( [relu?(x)] @ w + b [+ residual] )
# ----------------------------------------------------------------------------
def _mm_kernel(*refs, relu, input_relu, has_residual, nsteps):
    if has_residual:
        x_ref, w_ref, b_ref, r_ref, o_ref, acc_ref = refs
    else:
        x_ref, w_ref, b_ref, o_ref, acc_ref = refs
        r_ref = None
    k = pl.program_id(2)

    @pl.when(k == 0)
    def _init():
        acc_ref[...] = jnp.zeros_like(acc_ref)

    x = x_ref[...]
    if input_relu:
        x = jnp.maximum(x, 0)
    acc_ref[...] += jnp.dot(x, w_ref[...], preferred_element_type=jnp.float32)

    @pl.when(k == nsteps - 1)
    def _fin():
        out = acc_ref[...] + b_ref[...]
        if has_residual:
            out = out + r_ref[...]
        if relu:
            out = jnp.maximum(out, 0.0)
        o_ref[...] = out.astype(o_ref.dtype)


def matmul_bias(x, w, b, relu=False, input_relu=False, residual=None):
    """x:(M,K), w:(K,N), b:(N,), optional residual:(M,N).  Returns f32 (M,N)."""
    M, K = x.shape
    K2, N = w.shape
    assert K == K2
    TM = min(256, _round_up(M, 16))          # bf16 sublane alignment
    TN = min(256, _round_up(N, 128))         # lane-dense output stores
    TK = min(512, _round_up(K, 128))
    Mp, Np, Kp = _round_up(M, TM), _round_up(N, TN), _round_up(K, TK)

    xp = jnp.pad(x.astype(jnp.bfloat16), ((0, Mp - M), (0, Kp - K)))
    wp = jnp.pad(w.astype(jnp.bfloat16), ((0, Kp - K), (0, Np - N)))
    bp = jnp.pad(b.astype(jnp.float32).reshape(1, N), ((0, 0), (0, Np - N)))

    gm, gn, gk = Mp // TM, Np // TN, Kp // TK
    has_res = residual is not None

    in_specs = [
        pl.BlockSpec((TM, TK), lambda i, j, k: (i, k)),
        pl.BlockSpec((TK, TN), lambda i, j, k: (k, j)),
        pl.BlockSpec((1, TN), lambda i, j, k: (0, j)),
    ]
    operands = [xp, wp, bp]
    if has_res:
        rp = jnp.pad(residual.astype(jnp.float32), ((0, Mp - M), (0, Np - N)))
        in_specs.append(pl.BlockSpec((TM, TN), lambda i, j, k: (i, j)))
        operands.append(rp)

    kernel = functools.partial(_mm_kernel, relu=relu, input_relu=input_relu,
                               has_residual=has_res, nsteps=gk)
    bytes_accessed = (Mp * Kp + Kp * Np) * 2 + (Np + Mp * Np) * 4
    if has_res:
        bytes_accessed += Mp * Np * 4

    out = pl.pallas_call(
        kernel,
        out_shape=jax.ShapeDtypeStruct((Mp, Np), jnp.float32),
        grid=(gm, gn, gk),
        in_specs=in_specs,
        out_specs=pl.BlockSpec((TM, TN), lambda i, j, k: (i, j)),
        scratch_shapes=[pltpu.VMEM((TM, TN), jnp.float32)],
        compiler_params=pltpu.CompilerParams(
            dimension_semantics=("parallel", "parallel", "arbitrary")),
        cost_estimate=pl.CostEstimate(flops=2 * Mp * Np * Kp, transcendentals=0,
                                      bytes_accessed=int(bytes_accessed)),
    )(*operands)
    return out[:M, :N]


# ----------------------------------------------------------------------------
# Vector quantization kernel (tiled over M, codebook resident, lane-padded)
# ----------------------------------------------------------------------------
def _vq_kernel(z_ref, e_ref, esq_ref, zq_ref, loss_ref, perp_ref,
               sse_acc, cnt_acc, *, beta, m_total, inv_md, n_steps, tm):
    i = pl.program_id(0)

    @pl.when(i == 0)
    def _init():
        sse_acc[...] = jnp.zeros_like(sse_acc)
        cnt_acc[...] = jnp.zeros_like(cnt_acc)

    z = z_ref[...]                                       # (TM, Dp) f32
    e = e_ref[...]                                       # (Kp, Dp) f32
    kp = e.shape[0]
    # argmin_k ||z-e_k||^2  <=>  argmin_k (||e_k||^2 - 2 z.e_k); f32 throughout.
    ze = lax.dot_general(z, e, (((1,), (1,)), ((), ())),
                         preferred_element_type=jnp.float32)    # (TM, Kp)
    scores = esq_ref[...] - 2.0 * ze                            # (TM, Kp)

    col = lax.broadcasted_iota(jnp.int32, scores.shape, 1)
    min_s = jnp.min(scores, axis=1, keepdims=True)
    idx = jnp.min(jnp.where(scores == min_s, col, kp), axis=1, keepdims=True)
    onehot = (col == idx).astype(jnp.float32)                   # (TM, Kp)

    z_q = jnp.dot(onehot, e, preferred_element_type=jnp.float32)  # (TM, Dp)
    zq_ref[...] = z_q

    row = lax.broadcasted_iota(jnp.int32, (tm, 1), 0) + i * tm
    valid = (row < m_total).astype(jnp.float32)                 # (TM, 1)
    diff = (z_q - z) * valid
    sse_acc[...] += jnp.sum(diff * diff, axis=(0, 1), keepdims=True)
    cnt_acc[...] += jnp.sum(onehot * valid, axis=0, keepdims=True)

    @pl.when(i == n_steps - 1)
    def _fin():
        # forward value of mean((zq.detach()-z)^2) + beta*mean((zq-z.detach())^2)
        loss_ref[...] = (1.0 + beta) * sse_acc[...] * inv_md
        e_mean = cnt_acc[...] * (1.0 / m_total)
        ent = -jnp.sum(e_mean * jnp.log(e_mean + 1e-10), axis=1, keepdims=True)
        perp_ref[...] = jnp.exp(ent)


def vector_quantize(z_flat, embeddings, beta):
    M, D = z_flat.shape
    K = embeddings.shape[0]
    Dp, Kp = _round_up(D, 128), _round_up(K, 128)
    TM = min(512, _round_up(M, 8))
    Mp = _round_up(M, TM)
    grid_m = Mp // TM

    zp = jnp.pad(z_flat.astype(jnp.float32), ((0, Mp - M), (0, Dp - D)))
    ep = jnp.pad(embeddings.astype(jnp.float32), ((0, Kp - K), (0, Dp - D)))
    esq = jnp.sum(embeddings.astype(jnp.float32) ** 2, axis=1)   # VPU-style, once
    esq = jnp.pad(esq, (0, Kp - K), constant_values=1e30).reshape(1, Kp)

    kernel = functools.partial(_vq_kernel, beta=float(beta), m_total=M,
                               inv_md=1.0 / float(M * D), n_steps=grid_m, tm=TM)
    zq, loss, perp = pl.pallas_call(
        kernel,
        out_shape=(
            jax.ShapeDtypeStruct((Mp, Dp), jnp.float32),
            jax.ShapeDtypeStruct((1, 1), jnp.float32),
            jax.ShapeDtypeStruct((1, 1), jnp.float32),
        ),
        grid=(grid_m,),
        in_specs=[
            pl.BlockSpec((TM, Dp), lambda i: (i, 0)),
            pl.BlockSpec((Kp, Dp), lambda i: (0, 0)),
            pl.BlockSpec((1, Kp), lambda i: (0, 0)),
        ],
        out_specs=(
            pl.BlockSpec((TM, Dp), lambda i: (i, 0)),
            pl.BlockSpec((1, 1), lambda i: (0, 0)),
            pl.BlockSpec((1, 1), lambda i: (0, 0)),
        ),
        scratch_shapes=[pltpu.VMEM((1, 1), jnp.float32),
                        pltpu.VMEM((1, Kp), jnp.float32)],
        compiler_params=pltpu.CompilerParams(dimension_semantics=("arbitrary",)),
        cost_estimate=pl.CostEstimate(
            flops=4 * Mp * Kp * Dp, transcendentals=2 * Kp,
            bytes_accessed=(2 * Mp * Dp + Kp * Dp + Kp + Kp) * 4),
    )(zp, ep, esq)
    return loss[0, 0], zq[:M, :D], perp[0, 0]


# ----------------------------------------------------------------------------
# Convolution glue (im2col in JAX, matmul + fused epilogues in Pallas)
# ----------------------------------------------------------------------------
def conv2d(x, w, b, stride, padding, relu=False, input_relu=False, residual=None):
    """x:(N,H,W,Cin) NHWC; w:(KH,KW,Cin,Cout); b:(Cout,)."""
    N, H, W, Cin = x.shape
    KH, KW, _, Cout = w.shape
    xp = jnp.pad(x, ((0, 0), (padding, padding), (padding, padding), (0, 0)))
    Ho = (H + 2 * padding - KH) // stride + 1
    Wo = (W + 2 * padding - KW) // stride + 1
    patches = []
    for i in range(KH):
        for j in range(KW):
            patches.append(xp[:, i:i + stride * Ho:stride, j:j + stride * Wo:stride, :])
    cols = jnp.concatenate(patches, axis=-1).reshape(N * Ho * Wo, KH * KW * Cin)
    wmat = w.reshape(KH * KW * Cin, Cout)
    res2d = residual.reshape(N * Ho * Wo, Cout) if residual is not None else None
    out = matmul_bias(cols, wmat, b, relu=relu, input_relu=input_relu, residual=res2d)
    return out.reshape(N, Ho, Wo, Cout)


def _phase_taps(K, s, p, ph):
    """Kernel taps (on the flipped kernel) and input offsets for output phase ph."""
    P = K - 1 - p
    ks = [k for k in range(K) if (k - (P - ph)) % s == 0]
    offs = [(ph + k - P) // s for k in ks]
    return ks, offs


def conv_transpose2d(x, w_t, b, stride, padding, relu=False):
    """PyTorch-semantics ConvTranspose2d.  w_t: (Cin, Cout, KH, KW) torch layout.

    Stride>1 uses the sub-pixel decomposition: all s*s output phases share a
    single small-footprint im2col and one lane-dense matmul (phase outputs are
    concatenated along the channel axis, then interleaved spatially)."""
    Cin, Cout, KH, KW = w_t.shape
    w_f = jnp.transpose(jnp.flip(w_t, axis=(2, 3)), (2, 3, 0, 1))  # (KH,KW,Cin,Cout)
    if stride == 1:
        return conv2d(x, w_f, b, stride=1, padding=KH - 1 - padding, relu=relu)

    s = stride
    N, H, W, _ = x.shape
    Ho = (H - 1) * s - 2 * padding + KH
    Wo = (W - 1) * s - 2 * padding + KW
    if Ho != s * H or Wo != s * W:
        # Rare geometry: fall back to zero-dilated direct convolution.
        xd = jnp.zeros((N, (H - 1) * s + 1, (W - 1) * s + 1, Cin), x.dtype)
        xd = xd.at[:, ::s, ::s, :].set(x)
        return conv2d(xd, w_f, b, stride=1, padding=KH - 1 - padding, relu=relu)

    taps_h = [_phase_taps(KH, s, padding, ph) for ph in range(s)]
    taps_w = [_phase_taps(KW, s, padding, ph) for ph in range(s)]
    offs_h = sorted({o for _, offs in taps_h for o in offs})
    offs_w = sorted({o for _, offs in taps_w for o in offs})
    Fh, Fw = len(offs_h), len(offs_w)
    pad_lo_h, pad_hi_h = max(0, -offs_h[0]), max(0, offs_h[-1])
    pad_lo_w, pad_hi_w = max(0, -offs_w[0]), max(0, offs_w[-1])
    xp = jnp.pad(x, ((0, 0), (pad_lo_h, pad_hi_h), (pad_lo_w, pad_hi_w), (0, 0)))

    patches = []
    for oh in offs_h:
        for ow in offs_w:
            patches.append(xp[:, pad_lo_h + oh:pad_lo_h + oh + H,
                              pad_lo_w + ow:pad_lo_w + ow + W, :])
    cols = jnp.concatenate(patches, axis=-1).reshape(N * H * W, Fh * Fw * Cin)

    oh_pos = {o: t for t, o in enumerate(offs_h)}
    ow_pos = {o: t for t, o in enumerate(offs_w)}
    wmats, bvecs = [], []
    for ph_i in range(s):
        ks_h, o_h = taps_h[ph_i]
        for ph_j in range(s):
            ks_w, o_w = taps_w[ph_j]
            wm = jnp.zeros((Fh, Fw, Cin, Cout), w_f.dtype)
            for kh, ohh in zip(ks_h, o_h):
                for kw_, oww in zip(ks_w, o_w):
                    wm = wm.at[oh_pos[ohh], ow_pos[oww]].set(w_f[kh, kw_])
            wmats.append(wm.reshape(Fh * Fw * Cin, Cout))
            bvecs.append(b)
    w_all = jnp.concatenate(wmats, axis=1)          # (Fh*Fw*Cin, s*s*Cout)
    b_all = jnp.concatenate(bvecs, axis=0)          # (s*s*Cout,)

    out = matmul_bias(cols, w_all, b_all, relu=relu)        # (N*H*W, s*s*Cout)
    out = out.reshape(N, H, W, s, s, Cout)
    out = jnp.transpose(out, (0, 1, 3, 2, 4, 5)).reshape(N, Ho, Wo, Cout)
    return out


def residual_stack(x, res_params):
    """n layers of h <- h + Conv1x1(ReLU(Conv3x3(ReLU(h)))), final ReLU.
    Leading ReLU, residual add and trailing ReLU are fused into the matmul
    kernels' prologue/epilogue."""
    h = x
    n = len(res_params)
    for li, layer in enumerate(res_params):
        t = conv2d(h, layer["c3"]["w"], layer["c3"]["b"], stride=1, padding=1,
                   relu=True, input_relu=True)
        h = conv2d(t, layer["c1"]["w"], layer["c1"]["b"], stride=1, padding=0,
                   relu=(li == n - 1), residual=h)
    return h


# ----------------------------------------------------------------------------
# Parameter initialization (deterministic, synthetic)
# ----------------------------------------------------------------------------
def _conv_init(key, kh, kw, cin, cout, bias=True):
    k1, k2 = jax.random.split(key)
    bound = 1.0 / float(jnp.sqrt(kh * kw * cin))
    w = jax.random.uniform(k1, (kh, kw, cin, cout), jnp.float32, -bound, bound)
    b = (jax.random.uniform(k2, (cout,), jnp.float32, -bound, bound)
         if bias else jnp.zeros((cout,), jnp.float32))
    return {"w": w, "b": b}


def _tconv_init(key, cin, cout, kh, kw):
    k1, k2 = jax.random.split(key)
    bound = 1.0 / float(jnp.sqrt(kh * kw * cin))
    w = jax.random.uniform(k1, (cin, cout, kh, kw), jnp.float32, -bound, bound)
    b = jax.random.uniform(k2, (cout,), jnp.float32, -bound, bound)
    return {"w": w, "b": b}


def _res_stack_init(key, h_dim, res_h_dim, n_layers):
    layers = []
    for _ in range(n_layers):
        key, k1, k2 = jax.random.split(key, 3)
        layers.append({
            "c3": _conv_init(k1, 3, 3, h_dim, res_h_dim, bias=False),
            "c1": _conv_init(k2, 1, 1, res_h_dim, h_dim, bias=False),
        })
    return layers


def init_vqvae_params(key, h_dim, res_h_dim, n_res_layers, n_embeddings, embedding_dim):
    keys = jax.random.split(key, 10)
    return {
        "enc": {
            "c1": _conv_init(keys[0], 4, 4, 3, h_dim // 2),
            "c2": _conv_init(keys[1], 4, 4, h_dim // 2, h_dim),
            "c3": _conv_init(keys[2], 3, 3, h_dim, h_dim),
            "res": _res_stack_init(keys[3], h_dim, res_h_dim, n_res_layers),
        },
        "pre_q": _conv_init(keys[4], 1, 1, h_dim, embedding_dim),
        "embedding": jax.random.uniform(
            keys[5], (n_embeddings, embedding_dim), jnp.float32,
            -1.0 / n_embeddings, 1.0 / n_embeddings),
        "dec": {
            "t1": _tconv_init(keys[6], embedding_dim, h_dim, 3, 3),
            "res": _res_stack_init(keys[7], h_dim, res_h_dim, n_res_layers),
            "t2": _tconv_init(keys[8], h_dim, h_dim // 2, 4, 4),
            "t3": _tconv_init(keys[9], h_dim // 2, 3, 4, 4),
        },
    }


# ----------------------------------------------------------------------------
# VQVAE forward
# ----------------------------------------------------------------------------
def vqvae_forward(params, x_nchw, beta):
    x = jnp.transpose(x_nchw, (0, 2, 3, 1)).astype(jnp.float32)  # -> NHWC

    # ----- Encoder -----
    pe = params["enc"]
    h = conv2d(x, pe["c1"]["w"], pe["c1"]["b"], stride=2, padding=1, relu=True)
    h = conv2d(h, pe["c2"]["w"], pe["c2"]["b"], stride=2, padding=1, relu=True)
    h = conv2d(h, pe["c3"]["w"], pe["c3"]["b"], stride=1, padding=1, relu=False)
    h = residual_stack(h, pe["res"])

    # ----- pre-quantization 1x1 conv -----
    z_e = conv2d(h, params["pre_q"]["w"], params["pre_q"]["b"], stride=1, padding=0)

    # ----- Vector quantization -----
    N, H, W, D = z_e.shape
    z_flat = z_e.reshape(N * H * W, D)
    embedding_loss, zq_flat, perplexity = vector_quantize(z_flat, params["embedding"], beta)
    z_q = zq_flat.reshape(N, H, W, D)  # straight-through: forward value == z_q

    # ----- Decoder -----
    pd = params["dec"]
    h = conv_transpose2d(z_q, pd["t1"]["w"], pd["t1"]["b"], stride=1, padding=1)
    h = residual_stack(h, pd["res"])
    h = conv_transpose2d(h, pd["t2"]["w"], pd["t2"]["b"], stride=2, padding=1, relu=True)
    x_hat = conv_transpose2d(h, pd["t3"]["w"], pd["t3"]["b"], stride=2, padding=1)

    x_hat = jnp.transpose(x_hat, (0, 3, 1, 2))  # back to NCHW
    return embedding_loss, x_hat, perplexity


# ----------------------------------------------------------------------------
# main
# ----------------------------------------------------------------------------
if __name__ == "__main__":
    h_dim, res_h_dim, n_res_layers = 32, 16, 2
    n_embeddings, embedding_dim, beta = 16, 8, 0.25

    key = jax.random.PRNGKey(0)
    k_params, k_x = jax.random.split(key)
    params = init_vqvae_params(k_params, h_dim, res_h_dim, n_res_layers,
                               n_embeddings, embedding_dim)
    x = jax.random.normal(k_x, (2, 3, 16, 16), jnp.float32)  # NCHW like PyTorch

    fwd = jax.jit(lambda p, inp: vqvae_forward(p, inp, beta))
    embedding_loss, x_hat, perplexity = jax.block_until_ready(fwd(params, x))

    assert x_hat.shape == (2, 3, 16, 16)
    assert embedding_loss.shape == () and perplexity.shape == ()
    assert bool(jnp.all(jnp.isfinite(x_hat)))
    print("KERNEL_OK")
</pallas_src>

<mosaic_0001>
module attributes {stable_mosaic.version = 11 : i64} {
  func.func @_mm_kernel(%arg0: i32, %arg1: i32, %arg2: i32, %arg3: memref<128x128xbf16, #tpu.memory_space<vmem>>, %arg4: memref<128x128xbf16, #tpu.memory_space<vmem>>, %arg5: memref<1x128xf32, #tpu.memory_space<vmem>>, %arg6: memref<128x128xf32, #tpu.memory_space<vmem>>, %arg7: memref<128x128xf32, #tpu.memory_space<vmem>>) attributes {dimension_semantics = [#tpu.dimension_semantics<parallel>, #tpu.dimension_semantics<parallel>, #tpu.dimension_semantics<arbitrary>], iteration_bounds = array<i64: 1, 1, 1>, scalar_prefetch = 0 : i64, scratch_operands = 1 : i64, tpu.core_type = #tpu.core_type<tc>, window_params = [{transform_indices = @transform_0, window_bounds = array<i64: 128, 128>}, {transform_indices = @transform_1, window_bounds = array<i64: 128, 128>}, {transform_indices = @transform_2, window_bounds = array<i64: 1, 128>}, {transform_indices = @transform_3, window_bounds = array<i64: 128, 128>}]} {
    %c0_i32 = arith.constant 0 : i32
    %0 = arith.cmpi eq, %arg2, %c0_i32 : i32
    %1 = arith.extui %0 : i1 to i32
    %c0_i32_0 = arith.constant 0 : i32
    %2 = arith.cmpi ne, %1, %c0_i32_0 : i32
    scf.if %2 {
      %cst_10 = arith.constant 0.000000e+00 : f32
      %12 = vector.broadcast %cst_10 : f32 to vector<128x128xf32>
      %c0_11 = arith.constant 0 : index
      %c0_12 = arith.constant 0 : index
      %13 = vector.load %arg7[%c0_11, %c0_12] : memref<128x128xf32, #tpu.memory_space<vmem>>, vector<128x128xf32>
      tpu.vector_store %arg7[%c0_11, %c0_12], %12 {strides = array<i32>} : memref<128x128xf32, #tpu.memory_space<vmem>>, vector<128x128xf32>,
    } else {
    }
    %c0 = arith.constant 0 : index
    %c0_1 = arith.constant 0 : index
    %3 = vector.load %arg3[%c0, %c0_1] : memref<128x128xbf16, #tpu.memory_space<vmem>>, vector<128x128xbf16>
    %c0_2 = arith.constant 0 : index
    %c0_3 = arith.constant 0 : index
    %4 = vector.load %arg7[%c0_2, %c0_3] : memref<128x128xf32, #tpu.memory_space<vmem>>, vector<128x128xf32>
    %c0_4 = arith.constant 0 : index
    %c0_5 = arith.constant 0 : index
    %5 = vector.load %arg4[%c0_4, %c0_5] : memref<128x128xbf16, #tpu.memory_space<vmem>>, vector<128x128xbf16>
    %cst = arith.constant dense<0.000000e+00> : vector<128x128xf32>
    %6 = tpu.matmul %3, %5, %cst {dimension_numbers = #tpu.dot_dimension_numbers<[1], [0], [0], [1], [0, 0, 1, 1], [], []>} : vector<128x128xbf16>, vector<128x128xbf16>, vector<128x128xf32> -> vector<128x128xf32>
    %7 = arith.addf %4, %6 : vector<128x128xf32>
    %c0_6 = arith.constant 0 : index
    %c0_7 = arith.constant 0 : index
    %8 = vector.load %arg7[%c0_6, %c0_7] : memref<128x128xf32, #tpu.memory_space<vmem>>, vector<128x128xf32>
    tpu.vector_store %arg7[%c0_6, %c0_7], %7 {strides = array<i32>} : memref<128x128xf32, #tpu.memory_space<vmem>>, vector<128x128xf32>,
    %c0_i32_8 = arith.constant 0 : i32
    %9 = arith.cmpi eq, %arg2, %c0_i32_8 : i32
    %10 = arith.extui %9 : i1 to i32
    %c0_i32_9 = arith.constant 0 : i32
    %11 = arith.cmpi ne, %10, %c0_i32_9 : i32
    scf.if %11 {
      %c0_10 = arith.constant 0 : index
      %c0_11 = arith.constant 0 : index
      %12 = vector.load %arg7[%c0_10, %c0_11] : memref<128x128xf32, #tpu.memory_space<vmem>>, vector<128x128xf32>
      %c0_12 = arith.constant 0 : index
      %c0_13 = arith.constant 0 : index
      %13 = vector.load %arg5[%c0_12, %c0_13] : memref<1x128xf32, #tpu.memory_space<vmem>>, vector<1x128xf32>
      %14 = vector.broadcast %13 : vector<1x128xf32> to vector<128x128xf32>
      %15 = arith.addf %12, %14 : vector<128x128xf32>
      %cst_14 = arith.constant 0.000000e+00 : f32
      %16 = vector.broadcast %cst_14 : f32 to vector<128x128xf32>
      %17 = arith.maximumf %15, %16 : vector<128x128xf32>
      %c0_15 = arith.constant 0 : index
      %c0_16 = arith.constant 0 : index
      %18 = vector.load %arg6[%c0_15, %c0_16] : memref<128x128xf32, #tpu.memory_space<vmem>>, vector<128x128xf32>
      tpu.vector_store %arg6[%c0_15, %c0_16], %17 {strides = array<i32>} : memref<128x128xf32, #tpu.memory_space<vmem>>, vector<128x128xf32>,
    } else {
    }
    return
  }
  func.func @transform_0(%arg0: i32, %arg1: i32, %arg2: i32) -> (i32, i32) {
    %c0_i32 = arith.constant 0 : i32
    return %arg0, %arg2 : i32, i32
  }
  func.func @transform_1(%arg0: i32, %arg1: i32, %arg2: i32) -> (i32, i32) {
    %c0_i32 = arith.constant 0 : i32
    return %arg2, %arg1 : i32, i32
  }
  func.func @transform_2(%arg0: i32, %arg1: i32, %arg2: i32) -> (i32, i32) {
    %c0_i32 = arith.constant 0 : i32
    %c0_i32_0 = arith.constant 0 : i32
    return %c0_i32, %arg1 : i32, i32
  }
  func.func @transform_3(%arg0: i32, %arg1: i32, %arg2: i32) -> (i32, i32) {
    %c0_i32 = arith.constant 0 : i32
    return %arg0, %arg1 : i32, i32
  }
}

module attributes {stable_mosaic.version = 11 : i64} {
  func.func @_mm_kernel(%arg0: i32, %arg1: i32, %arg2: i32, %arg3: memref<32x256xbf16, #tpu.memory_space<vmem>>, %arg4: memref<256x128xbf16, #tpu.memory_space<vmem>>, %arg5: memref<1x128xf32, #tpu.memory_space<vmem>>, %arg6: memref<32x128xf32, #tpu.memory_space<vmem>>, %arg7: memref<32x128xf32, #tpu.memory_space<vmem>>) attributes {dimension_semantics = [#tpu.dimension_semantics<parallel>, #tpu.dimension_semantics<parallel>, #tpu.dimension_semantics<arbitrary>], iteration_bounds = array<i64: 1, 1, 1>, scalar_prefetch = 0 : i64, scratch_operands = 1 : i64, tpu.core_type = #tpu.core_type<tc>, window_params = [{transform_indices = @transform_0, window_bounds = array<i64: 32, 256>}, {transform_indices = @transform_1, window_bounds = array<i64: 256, 128>}, {transform_indices = @transform_2, window_bounds = array<i64: 1, 128>}, {transform_indices = @transform_3, window_bounds = array<i64: 32, 128>}]} {
    %c0_i32 = arith.constant 0 : i32
    %0 = arith.cmpi eq, %arg2, %c0_i32 : i32
    %1 = arith.extui %0 : i1 to i32
    %c0_i32_0 = arith.constant 0 : i32
    %2 = arith.cmpi ne, %1, %c0_i32_0 : i32
    scf.if %2 {
      %cst_10 = arith.constant 0.000000e+00 : f32
      %12 = vector.broadcast %cst_10 : f32 to vector<32x128xf32>
      %c0_11 = arith.constant 0 : index
      %c0_12 = arith.constant 0 : index
      %13 = vector.load %arg7[%c0_11, %c0_12] : memref<32x128xf32, #tpu.memory_space<vmem>>, vector<32x128xf32>
      tpu.vector_store %arg7[%c0_11, %c0_12], %12 {strides = array<i32>} : memref<32x128xf32, #tpu.memory_space<vmem>>, vector<32x128xf32>,
    } else {
    }
    %c0 = arith.constant 0 : index
    %c0_1 = arith.constant 0 : index
    %3 = vector.load %arg3[%c0, %c0_1] : memref<32x256xbf16, #tpu.memory_space<vmem>>, vector<32x256xbf16>
    %c0_2 = arith.constant 0 : index
    %c0_3 = arith.constant 0 : index
    %4 = vector.load %arg7[%c0_2, %c0_3] : memref<32x128xf32, #tpu.memory_space<vmem>>, vector<32x128xf32>
    %c0_4 = arith.constant 0 : index
    %c0_5 = arith.constant 0 : index
    %5 = vector.load %arg4[%c0_4, %c0_5] : memref<256x128xbf16, #tpu.memory_space<vmem>>, vector<256x128xbf16>
    %cst = arith.constant dense<0.000000e+00> : vector<32x128xf32>
    %6 = tpu.matmul %3, %5, %cst {dimension_numbers = #tpu.dot_dimension_numbers<[1], [0], [0], [1], [0, 0, 1, 1], [], []>} : vector<32x256xbf16>, vector<256x128xbf16>, vector<32x128xf32> -> vector<32x128xf32>
    %7 = arith.addf %4, %6 : vector<32x128xf32>
    %c0_6 = arith.constant 0 : index
    %c0_7 = arith.constant 0 : index
    %8 = vector.load %arg7[%c0_6, %c0_7] : memref<32x128xf32, #tpu.memory_space<vmem>>, vector<32x128xf32>
    tpu.vector_store %arg7[%c0_6, %c0_7], %7 {strides = array<i32>} : memref<32x128xf32, #tpu.memory_space<vmem>>, vector<32x128xf32>,
    %c0_i32_8 = arith.constant 0 : i32
    %9 = arith.cmpi eq, %arg2, %c0_i32_8 : i32
    %10 = arith.extui %9 : i1 to i32
    %c0_i32_9 = arith.constant 0 : i32
    %11 = arith.cmpi ne, %10, %c0_i32_9 : i32
    scf.if %11 {
      %c0_10 = arith.constant 0 : index
      %c0_11 = arith.constant 0 : index
      %12 = vector.load %arg7[%c0_10, %c0_11] : memref<32x128xf32, #tpu.memory_space<vmem>>, vector<32x128xf32>
      %c0_12 = arith.constant 0 : index
      %c0_13 = arith.constant 0 : index
      %13 = vector.load %arg5[%c0_12, %c0_13] : memref<1x128xf32, #tpu.memory_space<vmem>>, vector<1x128xf32>
      %14 = vector.broadcast %13 : vector<1x128xf32> to vector<32x128xf32>
      %15 = arith.addf %12, %14 : vector<32x128xf32>
      %cst_14 = arith.constant 0.000000e+00 : f32
      %16 = vector.broadcast %cst_14 : f32 to vector<32x128xf32>
      %17 = arith.maximumf %15, %16 : vector<32x128xf32>
      %c0_15 = arith.constant 0 : index
      %c0_16 = arith.constant 0 : index
      %18 = vector.load %arg6[%c0_15, %c0_16] : memref<32x128xf32, #tpu.memory_space<vmem>>, vector<32x128xf32>
      tpu.vector_store %arg6[%c0_15, %c0_16], %17 {strides = array<i32>} : memref<32x128xf32, #tpu.memory_space<vmem>>, vector<32x128xf32>,
    } else {
    }
    return
  }
  func.func @transform_0(%arg0: i32, %arg1: i32, %arg2: i32) -> (i32, i32) {
    %c0_i32 = arith.constant 0 : i32
    return %arg0, %arg2 : i32, i32
  }
  func.func @transform_1(%arg0: i32, %arg1: i32, %arg2: i32) -> (i32, i32) {
    %c0_i32 = arith.constant 0 : i32
    return %arg2, %arg1 : i32, i32
  }
  func.func @transform_2(%arg0: i32, %arg1: i32, %arg2: i32) -> (i32, i32) {
    %c0_i32 = arith.constant 0 : i32
    %c0_i32_0 = arith.constant 0 : i32
    return %c0_i32, %arg1 : i32, i32
  }
  func.func @transform_3(%arg0: i32, %arg1: i32, %arg2: i32) -> (i32, i32) {
    %c0_i32 = arith.constant 0 : i32
    return %arg0, %arg1 : i32, i32
  }
}

module attributes {stable_mosaic.version = 11 : i64} {
  func.func @_mm_kernel(%arg0: i32, %arg1: i32, %arg2: i32, %arg3: memref<32x384xbf16, #tpu.memory_space<vmem>>, %arg4: memref<384x128xbf16, #tpu.memory_space<vmem>>, %arg5: memref<1x128xf32, #tpu.memory_space<vmem>>, %arg6: memref<32x128xf32, #tpu.memory_space<vmem>>, %arg7: memref<32x128xf32, #tpu.memory_space<vmem>>) attributes {dimension_semantics = [#tpu.dimension_semantics<parallel>, #tpu.dimension_semantics<parallel>, #tpu.dimension_semantics<arbitrary>], iteration_bounds = array<i64: 1, 1, 1>, scalar_prefetch = 0 : i64, scratch_operands = 1 : i64, tpu.core_type = #tpu.core_type<tc>, window_params = [{transform_indices = @transform_0, window_bounds = array<i64: 32, 384>}, {transform_indices = @transform_1, window_bounds = array<i64: 384, 128>}, {transform_indices = @transform_2, window_bounds = array<i64: 1, 128>}, {transform_indices = @transform_3, window_bounds = array<i64: 32, 128>}]} {
    %c0_i32 = arith.constant 0 : i32
    %0 = arith.cmpi eq, %arg2, %c0_i32 : i32
    %1 = arith.extui %0 : i1 to i32
    %c0_i32_0 = arith.constant 0 : i32
    %2 = arith.cmpi ne, %1, %c0_i32_0 : i32
    scf.if %2 {
      %cst_10 = arith.constant 0.000000e+00 : f32
      %12 = vector.broadcast %cst_10 : f32 to vector<32x128xf32>
      %c0_11 = arith.constant 0 : index
      %c0_12 = arith.constant 0 : index
      %13 = vector.load %arg7[%c0_11, %c0_12] : memref<32x128xf32, #tpu.memory_space<vmem>>, vector<32x128xf32>
      tpu.vector_store %arg7[%c0_11, %c0_12], %12 {strides = array<i32>} : memref<32x128xf32, #tpu.memory_space<vmem>>, vector<32x128xf32>,
    } else {
    }
    %c0 = arith.constant 0 : index
    %c0_1 = arith.constant 0 : index
    %3 = vector.load %arg3[%c0, %c0_1] : memref<32x384xbf16, #tpu.memory_space<vmem>>, vector<32x384xbf16>
    %c0_2 = arith.constant 0 : index
    %c0_3 = arith.constant 0 : index
    %4 = vector.load %arg7[%c0_2, %c0_3] : memref<32x128xf32, #tpu.memory_space<vmem>>, vector<32x128xf32>
    %c0_4 = arith.constant 0 : index
    %c0_5 = arith.constant 0 : index
    %5 = vector.load %arg4[%c0_4, %c0_5] : memref<384x128xbf16, #tpu.memory_space<vmem>>, vector<384x128xbf16>
    %cst = arith.constant dense<0.000000e+00> : vector<32x128xf32>
    %6 = tpu.matmul %3, %5, %cst {dimension_numbers = #tpu.dot_dimension_numbers<[1], [0], [0], [1], [0, 0, 1, 1], [], []>} : vector<32x384xbf16>, vector<384x128xbf16>, vector<32x128xf32> -> vector<32x128xf32>
    %7 = arith.addf %4, %6 : vector<32x128xf32>
    %c0_6 = arith.constant 0 : index
    %c0_7 = arith.constant 0 : index
    %8 = vector.load %arg7[%c0_6, %c0_7] : memref<32x128xf32, #tpu.memory_space<vmem>>, vector<32x128xf32>
    tpu.vector_store %arg7[%c0_6, %c0_7], %7 {strides = array<i32>} : memref<32x128xf32, #tpu.memory_space<vmem>>, vector<32x128xf32>,
    %c0_i32_8 = arith.constant 0 : i32
    %9 = arith.cmpi eq, %arg2, %c0_i32_8 : i32
    %10 = arith.extui %9 : i1 to i32
    %c0_i32_9 = arith.constant 0 : i32
    %11 = arith.cmpi ne, %10, %c0_i32_9 : i32
    scf.if %11 {
      %c0_10 = arith.constant 0 : index
      %c0_11 = arith.constant 0 : index
      %12 = vector.load %arg7[%c0_10, %c0_11] : memref<32x128xf32, #tpu.memory_space<vmem>>, vector<32x128xf32>
      %c0_12 = arith.constant 0 : index
      %c0_13 = arith.constant 0 : index
      %13 = vector.load %arg5[%c0_12, %c0_13] : memref<1x128xf32, #tpu.memory_space<vmem>>, vector<1x128xf32>
      %14 = vector.broadcast %13 : vector<1x128xf32> to vector<32x128xf32>
      %15 = arith.addf %12, %14 : vector<32x128xf32>
      %c0_14 = arith.constant 0 : index
      %c0_15 = arith.constant 0 : index
      %16 = vector.load %arg6[%c0_14, %c0_15] : memref<32x128xf32, #tpu.memory_space<vmem>>, vector<32x128xf32>
      tpu.vector_store %arg6[%c0_14, %c0_15], %15 {strides = array<i32>} : memref<32x128xf32, #tpu.memory_space<vmem>>, vector<32x128xf32>,
    } else {
    }
    return
  }
  func.func @transform_0(%arg0: i32, %arg1: i32, %arg2: i32) -> (i32, i32) {
    %c0_i32 = arith.constant 0 : i32
    return %arg0, %arg2 : i32, i32
  }
  func.func @transform_1(%arg0: i32, %arg1: i32, %arg2: i32) -> (i32, i32) {
    %c0_i32 = arith.constant 0 : i32
    return %arg2, %arg1 : i32, i32
  }
  func.func @transform_2(%arg0: i32, %arg1: i32, %arg2: i32) -> (i32, i32) {
    %c0_i32 = arith.constant 0 : i32
    %c0_i32_0 = arith.constant 0 : i32
    return %c0_i32, %arg1 : i32, i32
  }
  func.func @transform_3(%arg0: i32, %arg1: i32, %arg2: i32) -> (i32, i32) {
    %c0_i32 = arith.constant 0 : i32
    return %arg0, %arg1 : i32, i32
  }
}

module attributes {stable_mosaic.version = 11 : i64} {
  func.func @_mm_kernel(%arg0: i32, %arg1: i32, %arg2: i32, %arg3: memref<32x384xbf16, #tpu.memory_space<vmem>>, %arg4: memref<384x128xbf16, #tpu.memory_space<vmem>>, %arg5: memref<1x128xf32, #tpu.memory_space<vmem>>, %arg6: memref<32x128xf32, #tpu.memory_space<vmem>>, %arg7: memref<32x128xf32, #tpu.memory_space<vmem>>) attributes {dimension_semantics = [#tpu.dimension_semantics<parallel>, #tpu.dimension_semantics<parallel>, #tpu.dimension_semantics<arbitrary>], iteration_bounds = array<i64: 1, 1, 1>, scalar_prefetch = 0 : i64, scratch_operands = 1 : i64, tpu.core_type = #tpu.core_type<tc>, window_params = [{transform_indices = @transform_0, window_bounds = array<i64: 32, 384>}, {transform_indices = @transform_1, window_bounds = array<i64: 384, 128>}, {transform_indices = @transform_2, window_bounds = array<i64: 1, 128>}, {transform_indices = @transform_3, window_bounds = array<i64: 32, 128>}]} {
    %c0_i32 = arith.constant 0 : i32
    %0 = arith.cmpi eq, %arg2, %c0_i32 : i32
    %1 = arith.extui %0 : i1 to i32
    %c0_i32_0 = arith.constant 0 : i32
    %2 = arith.cmpi ne, %1, %c0_i32_0 : i32
    scf.if %2 {
      %cst_11 = arith.constant 0.000000e+00 : f32
      %14 = vector.broadcast %cst_11 : f32 to vector<32x128xf32>
      %c0_12 = arith.constant 0 : index
      %c0_13 = arith.constant 0 : index
      %15 = vector.load %arg7[%c0_12, %c0_13] : memref<32x128xf32, #tpu.memory_space<vmem>>, vector<32x128xf32>
      tpu.vector_store %arg7[%c0_12, %c0_13], %14 {strides = array<i32>} : memref<32x128xf32, #tpu.memory_space<vmem>>, vector<32x128xf32>,
    } else {
    }
    %c0 = arith.constant 0 : index
    %c0_1 = arith.constant 0 : index
    %3 = vector.load %arg3[%c0, %c0_1] : memref<32x384xbf16, #tpu.memory_space<vmem>>, vector<32x384xbf16>
    %cst = arith.constant 0.000000e+00 : bf16
    %4 = vector.broadcast %cst : bf16 to vector<32x384xbf16>
    %5 = arith.maximumf %3, %4 : vector<32x384xbf16>
    %c0_2 = arith.constant 0 : index
    %c0_3 = arith.constant 0 : index
    %6 = vector.load %arg7[%c0_2, %c0_3] : memref<32x128xf32, #tpu.memory_space<vmem>>, vector<32x128xf32>
    %c0_4 = arith.constant 0 : index
    %c0_5 = arith.constant 0 : index
    %7 = vector.load %arg4[%c0_4, %c0_5] : memref<384x128xbf16, #tpu.memory_space<vmem>>, vector<384x128xbf16>
    %cst_6 = arith.constant dense<0.000000e+00> : vector<32x128xf32>
    %8 = tpu.matmul %5, %7, %cst_6 {dimension_numbers = #tpu.dot_dimension_numbers<[1], [0], [0], [1], [0, 0, 1, 1], [], []>} : vector<32x384xbf16>, vector<384x128xbf16>, vector<32x128xf32> -> vector<32x128xf32>
    %9 = arith.addf %6, %8 : vector<32x128xf32>
    %c0_7 = arith.constant 0 : index
    %c0_8 = arith.constant 0 : index
    %10 = vector.load %arg7[%c0_7, %c0_8] : memref<32x128xf32, #tpu.memory_space<vmem>>, vector<32x128xf32>
    tpu.vector_store %arg7[%c0_7, %c0_8], %9 {strides = array<i32>} : memref<32x128xf32, #tpu.memory_space<vmem>>, vector<32x128xf32>,
    %c0_i32_9 = arith.constant 0 : i32
    %11 = arith.cmpi eq, %arg2, %c0_i32_9 : i32
    %12 = arith.extui %11 : i1 to i32
    %c0_i32_10 = arith.constant 0 : i32
    %13 = arith.cmpi ne, %12, %c0_i32_10 : i32
    scf.if %13 {
      %c0_11 = arith.constant 0 : index
      %c0_12 = arith.constant 0 : index
      %14 = vector.load %arg7[%c0_11, %c0_12] : memref<32x128xf32, #tpu.memory_space<vmem>>, vector<32x128xf32>
      %c0_13 = arith.constant 0 : index
      %c0_14 = arith.constant 0 : index
      %15 = vector.load %arg5[%c0_13, %c0_14] : memref<1x128xf32, #tpu.memory_space<vmem>>, vector<1x128xf32>
      %16 = vector.broadcast %15 : vector<1x128xf32> to vector<32x128xf32>
      %17 = arith.addf %14, %16 : vector<32x128xf32>
      %cst_15 = arith.constant 0.000000e+00 : f32
      %18 = vector.broadcast %cst_15 : f32 to vector<32x128xf32>
      %19 = arith.maximumf %17, %18 : vector<32x128xf32>
      %c0_16 = arith.constant 0 : index
      %c0_17 = arith.constant 0 : index
      %20 = vector.load %arg6[%c0_16, %c0_17] : memref<32x128xf32, #tpu.memory_space<vmem>>, vector<32x128xf32>
      tpu.vector_store %arg6[%c0_16, %c0_17], %19 {strides = array<i32>} : memref<32x128xf32, #tpu.memory_space<vmem>>, vector<32x128xf32>,
    } else {
    }
    return
  }
  func.func @transform_0(%arg0: i32, %arg1: i32, %arg2: i32) -> (i32, i32) {
    %c0_i32 = arith.constant 0 : i32
    return %arg0, %arg2 : i32, i32
  }
  func.func @transform_1(%arg0: i32, %arg1: i32, %arg2: i32) -> (i32, i32) {
    %c0_i32 = arith.constant 0 : i32
    return %arg2, %arg1 : i32, i32
  }
  func.func @transform_2(%arg0: i32, %arg1: i32, %arg2: i32) -> (i32, i32) {
    %c0_i32 = arith.constant 0 : i32
    %c0_i32_0 = arith.constant 0 : i32
    return %c0_i32, %arg1 : i32, i32
  }
  func.func @transform_3(%arg0: i32, %arg1: i32, %arg2: i32) -> (i32, i32) {
    %c0_i32 = arith.constant 0 : i32
    return %arg0, %arg1 : i32, i32
  }
}

module attributes {stable_mosaic.version = 11 : i64} {
  func.func @_mm_kernel(%arg0: i32, %arg1: i32, %arg2: i32, %arg3: memref<32x128xbf16, #tpu.memory_space<vmem>>, %arg4: memref<128x128xbf16, #tpu.memory_space<vmem>>, %arg5: memref<1x128xf32, #tpu.memory_space<vmem>>, %arg6: memref<32x128xf32, #tpu.memory_space<vmem>>, %arg7: memref<32x128xf32, #tpu.memory_space<vmem>>, %arg8: memref<32x128xf32, #tpu.memory_space<vmem>>) attributes {dimension_semantics = [#tpu.dimension_semantics<parallel>, #tpu.dimension_semantics<parallel>, #tpu.dimension_semantics<arbitrary>], iteration_bounds = array<i64: 1, 1, 1>, scalar_prefetch = 0 : i64, scratch_operands = 1 : i64, tpu.core_type = #tpu.core_type<tc>, window_params = [{transform_indices = @transform_0, window_bounds = array<i64: 32, 128>}, {transform_indices = @transform_1, window_bounds = array<i64: 128, 128>}, {transform_indices = @transform_2, window_bounds = array<i64: 1, 128>}, {transform_indices = @transform_3, window_bounds = array<i64: 32, 128>}, {transform_indices = @transform_4, window_bounds = array<i64: 32, 128>}]} {
    %c0_i32 = arith.constant 0 : i32
    %0 = arith.cmpi eq, %arg2, %c0_i32 : i32
    %1 = arith.extui %0 : i1 to i32
    %c0_i32_0 = arith.constant 0 : i32
    %2 = arith.cmpi ne, %1, %c0_i32_0 : i32
    scf.if %2 {
      %cst_10 = arith.constant 0.000000e+00 : f32
      %12 = vector.broadcast %cst_10 : f32 to vector<32x128xf32>
      %c0_11 = arith.constant 0 : index
      %c0_12 = arith.constant 0 : index
      %13 = vector.load %arg8[%c0_11, %c0_12] : memref<32x128xf32, #tpu.memory_space<vmem>>, vector<32x128xf32>
      tpu.vector_store %arg8[%c0_11, %c0_12], %12 {strides = array<i32>} : memref<32x128xf32, #tpu.memory_space<vmem>>, vector<32x128xf32>,
    } else {
    }
    %c0 = arith.constant 0 : index
    %c0_1 = arith.constant 0 : index
    %3 = vector.load %arg3[%c0, %c0_1] : memref<32x128xbf16, #tpu.memory_space<vmem>>, vector<32x128xbf16>
    %c0_2 = arith.constant 0 : index
    %c0_3 = arith.constant 0 : index
    %4 = vector.load %arg8[%c0_2, %c0_3] : memref<32x128xf32, #tpu.memory_space<vmem>>, vector<32x128xf32>
    %c0_4 = arith.constant 0 : index
    %c0_5 = arith.constant 0 : index
    %5 = vector.load %arg4[%c0_4, %c0_5] : memref<128x128xbf16, #tpu.memory_space<vmem>>, vector<128x128xbf16>
    %cst = arith.constant dense<0.000000e+00> : vector<32x128xf32>
    %6 = tpu.matmul %3, %5, %cst {dimension_numbers = #tpu.dot_dimension_numbers<[1], [0], [0], [1], [0, 0, 1, 1], [], []>} : vector<32x128xbf16>, vector<128x128xbf16>, vector<32x128xf32> -> vector<32x128xf32>
    %7 = arith.addf %4, %6 : vector<32x128xf32>
    %c0_6 = arith.constant 0 : index
    %c0_7 = arith.constant 0 : index
    %8 = vector.load %arg8[%c0_6, %c0_7] : memref<32x128xf32, #tpu.memory_space<vmem>>, vector<32x128xf32>
    tpu.vector_store %arg8[%c0_6, %c0_7], %7 {strides = array<i32>} : memref<32x128xf32, #tpu.memory_space<vmem>>, vector<32x128xf32>,
    %c0_i32_8 = arith.constant 0 : i32
    %9 = arith.cmpi eq, %arg2, %c0_i32_8 : i32
    %10 = arith.extui %9 : i1 to i32
    %c0_i32_9 = arith.constant 0 : i32
    %11 = arith.cmpi ne, %10, %c0_i32_9 : i32
    scf.if %11 {
      %c0_10 = arith.constant 0 : index
      %c0_11 = arith.constant 0 : index
      %12 = vector.load %arg8[%c0_10, %c0_11] : memref<32x128xf32, #tpu.memory_space<vmem>>, vector<32x128xf32>
      %c0_12 = arith.constant 0 : index
      %c0_13 = arith.constant 0 : index
      %13 = vector.load %arg5[%c0_12, %c0_13] : memref<1x128xf32, #tpu.memory_space<vmem>>, vector<1x128xf32>
      %14 = vector.broadcast %13 : vector<1x128xf32> to vector<32x128xf32>
      %15 = arith.addf %12, %14 : vector<32x128xf32>
      %c0_14 = arith.constant 0 : index
      %c0_15 = arith.constant 0 : index
      %16 = vector.load %arg6[%c0_14, %c0_15] : memref<32x128xf32, #tpu.memory_space<vmem>>, vector<32x128xf32>
      %17 = arith.addf %15, %16 : vector<32x128xf32>
      %c0_16 = arith.constant 0 : index
      %c0_17 = arith.constant 0 : index
      %18 = vector.load %arg7[%c0_16, %c0_17] : memref<32x128xf32, #tpu.memory_space<vmem>>, vector<32x128xf32>
      tpu.vector_store %arg7[%c0_16, %c0_17], %17 {strides = array<i32>} : memref<32x128xf32, #tpu.memory_space<vmem>>, vector<32x128xf32>,
    } else {
    }
    return
  }
  func.func @transform_0(%arg0: i32, %arg1: i32, %arg2: i32) -> (i32, i32) {
    %c0_i32 = arith.constant 0 : i32
    return %arg0, %arg2 : i32, i32
  }
  func.func @transform_1(%arg0: i32, %arg1: i32, %arg2: i32) -> (i32, i32) {
    %c0_i32 = arith.constant 0 : i32
    return %arg2, %arg1 : i32, i32
  }
  func.func @transform_2(%arg0: i32, %arg1: i32, %arg2: i32) -> (i32, i32) {
    %c0_i32 = arith.constant 0 : i32
    %c0_i32_0 = arith.constant 0 : i32
    return %c0_i32, %arg1 : i32, i32
  }
  func.func @transform_3(%arg0: i32, %arg1: i32, %arg2: i32) -> (i32, i32) {
    %c0_i32 = arith.constant 0 : i32
    return %arg0, %arg1 : i32, i32
  }
  func.func @transform_4(%arg0: i32, %arg1: i32, %arg2: i32) -> (i32, i32) {
    %c0_i32 = arith.constant 0 : i32
    return %arg0, %arg1 : i32, i32
  }
}

module attributes {stable_mosaic.version = 11 : i64} {
  func.func @_mm_kernel(%arg0: i32, %arg1: i32, %arg2: i32, %arg3: memref<32x128xbf16, #tpu.memory_space<vmem>>, %arg4: memref<128x128xbf16, #tpu.memory_space<vmem>>, %arg5: memref<1x128xf32, #tpu.memory_space<vmem>>, %arg6: memref<32x128xf32, #tpu.memory_space<vmem>>, %arg7: memref<32x128xf32, #tpu.memory_space<vmem>>, %arg8: memref<32x128xf32, #tpu.memory_space<vmem>>) attributes {dimension_semantics = [#tpu.dimension_semantics<parallel>, #tpu.dimension_semantics<parallel>, #tpu.dimension_semantics<arbitrary>], iteration_bounds = array<i64: 1, 1, 1>, scalar_prefetch = 0 : i64, scratch_operands = 1 : i64, tpu.core_type = #tpu.core_type<tc>, window_params = [{transform_indices = @transform_0, window_bounds = array<i64: 32, 128>}, {transform_indices = @transform_1, window_bounds = array<i64: 128, 128>}, {transform_indices = @transform_2, window_bounds = array<i64: 1, 128>}, {transform_indices = @transform_3, window_bounds = array<i64: 32, 128>}, {transform_indices = @transform_4, window_bounds = array<i64: 32, 128>}]} {
    %c0_i32 = arith.constant 0 : i32
    %0 = arith.cmpi eq, %arg2, %c0_i32 : i32
    %1 = arith.extui %0 : i1 to i32
    %c0_i32_0 = arith.constant 0 : i32
    %2 = arith.cmpi ne, %1, %c0_i32_0 : i32
    scf.if %2 {
      %cst_10 = arith.constant 0.000000e+00 : f32
      %12 = vector.broadcast %cst_10 : f32 to vector<32x128xf32>
      %c0_11 = arith.constant 0 : index
      %c0_12 = arith.constant 0 : index
      %13 = vector.load %arg8[%c0_11, %c0_12] : memref<32x128xf32, #tpu.memory_space<vmem>>, vector<32x128xf32>
      tpu.vector_store %arg8[%c0_11, %c0_12], %12 {strides = array<i32>} : memref<32x128xf32, #tpu.memory_space<vmem>>, vector<32x128xf32>,
    } else {
    }
    %c0 = arith.constant 0 : index
    %c0_1 = arith.constant 0 : index
    %3 = vector.load %arg3[%c0, %c0_1] : memref<32x128xbf16, #tpu.memory_space<vmem>>, vector<32x128xbf16>
    %c0_2 = arith.constant 0 : index
    %c0_3 = arith.constant 0 : index
    %4 = vector.load %arg8[%c0_2, %c0_3] : memref<32x128xf32, #tpu.memory_space<vmem>>, vector<32x128xf32>
    %c0_4 = arith.constant 0 : index
    %c0_5 = arith.constant 0 : index
    %5 = vector.load %arg4[%c0_4, %c0_5] : memref<128x128xbf16, #tpu.memory_space<vmem>>, vector<128x128xbf16>
    %cst = arith.constant dense<0.000000e+00> : vector<32x128xf32>
    %6 = tpu.matmul %3, %5, %cst {dimension_numbers = #tpu.dot_dimension_numbers<[1], [0], [0], [1], [0, 0, 1, 1], [], []>} : vector<32x128xbf16>, vector<128x128xbf16>, vector<32x128xf32> -> vector<32x128xf32>
    %7 = arith.addf %4, %6 : vector<32x128xf32>
    %c0_6 = arith.constant 0 : index
    %c0_7 = arith.constant 0 : index
    %8 = vector.load %arg8[%c0_6, %c0_7] : memref<32x128xf32, #tpu.memory_space<vmem>>, vector<32x128xf32>
    tpu.vector_store %arg8[%c0_6, %c0_7], %7 {strides = array<i32>} : memref<32x128xf32, #tpu.memory_space<vmem>>, vector<32x128xf32>,
    %c0_i32_8 = arith.constant 0 : i32
    %9 = arith.cmpi eq, %arg2, %c0_i32_8 : i32
    %10 = arith.extui %9 : i1 to i32
    %c0_i32_9 = arith.constant 0 : i32
    %11 = arith.cmpi ne, %10, %c0_i32_9 : i32
    scf.if %11 {
      %c0_10 = arith.constant 0 : index
      %c0_11 = arith.constant 0 : index
      %12 = vector.load %arg8[%c0_10, %c0_11] : memref<32x128xf32, #tpu.memory_space<vmem>>, vector<32x128xf32>
      %c0_12 = arith.constant 0 : index
      %c0_13 = arith.constant 0 : index
      %13 = vector.load %arg5[%c0_12, %c0_13] : memref<1x128xf32, #tpu.memory_space<vmem>>, vector<1x128xf32>
      %14 = vector.broadcast %13 : vector<1x128xf32> to vector<32x128xf32>
      %15 = arith.addf %12, %14 : vector<32x128xf32>
      %c0_14 = arith.constant 0 : index
      %c0_15 = arith.constant 0 : index
      %16 = vector.load %arg6[%c0_14, %c0_15] : memref<32x128xf32, #tpu.memory_space<vmem>>, vector<32x128xf32>
      %17 = arith.addf %15, %16 : vector<32x128xf32>
      %cst_16 = arith.constant 0.000000e+00 : f32
      %18 = vector.broadcast %cst_16 : f32 to vector<32x128xf32>
      %19 = arith.maximumf %17, %18 : vector<32x128xf32>
      %c0_17 = arith.constant 0 : index
      %c0_18 = arith.constant 0 : index
      %20 = vector.load %arg7[%c0_17, %c0_18] : memref<32x128xf32, #tpu.memory_space<vmem>>, vector<32x128xf32>
      tpu.vector_store %arg7[%c0_17, %c0_18], %19 {strides = array<i32>} : memref<32x128xf32, #tpu.memory_space<vmem>>, vector<32x128xf32>,
    } else {
    }
    return
  }
  func.func @transform_0(%arg0: i32, %arg1: i32, %arg2: i32) -> (i32, i32) {
    %c0_i32 = arith.constant 0 : i32
    return %arg0, %arg2 : i32, i32
  }
  func.func @transform_1(%arg0: i32, %arg1: i32, %arg2: i32) -> (i32, i32) {
    %c0_i32 = arith.constant 0 : i32
    return %arg2, %arg1 : i32, i32
  }
  func.func @transform_2(%arg0: i32, %arg1: i32, %arg2: i32) -> (i32, i32) {
    %c0_i32 = arith.constant 0 : i32
    %c0_i32_0 = arith.constant 0 : i32
    return %c0_i32, %arg1 : i32, i32
  }
  func.func @transform_3(%arg0: i32, %arg1: i32, %arg2: i32) -> (i32, i32) {
    %c0_i32 = arith.constant 0 : i32
    return %arg0, %arg1 : i32, i32
  }
  func.func @transform_4(%arg0: i32, %arg1: i32, %arg2: i32) -> (i32, i32) {
    %c0_i32 = arith.constant 0 : i32
    return %arg0, %arg1 : i32, i32
  }
}

module attributes {stable_mosaic.version = 11 : i64} {
  func.func @_mm_kernel(%arg0: i32, %arg1: i32, %arg2: i32, %arg3: memref<32x128xbf16, #tpu.memory_space<vmem>>, %arg4: memref<128x128xbf16, #tpu.memory_space<vmem>>, %arg5: memref<1x128xf32, #tpu.memory_space<vmem>>, %arg6: memref<32x128xf32, #tpu.memory_space<vmem>>, %arg7: memref<32x128xf32, #tpu.memory_space<vmem>>) attributes {dimension_semantics = [#tpu.dimension_semantics<parallel>, #tpu.dimension_semantics<parallel>, #tpu.dimension_semantics<arbitrary>], iteration_bounds = array<i64: 1, 1, 1>, scalar_prefetch = 0 : i64, scratch_operands = 1 : i64, tpu.core_type = #tpu.core_type<tc>, window_params = [{transform_indices = @transform_0, window_bounds = array<i64: 32, 128>}, {transform_indices = @transform_1, window_bounds = array<i64: 128, 128>}, {transform_indices = @transform_2, window_bounds = array<i64: 1, 128>}, {transform_indices = @transform_3, window_bounds = array<i64: 32, 128>}]} {
    %c0_i32 = arith.constant 0 : i32
    %0 = arith.cmpi eq, %arg2, %c0_i32 : i32
    %1 = arith.extui %0 : i1 to i32
    %c0_i32_0 = arith.constant 0 : i32
    %2 = arith.cmpi ne, %1, %c0_i32_0 : i32
    scf.if %2 {
      %cst_10 = arith.constant 0.000000e+00 : f32
      %12 = vector.broadcast %cst_10 : f32 to vector<32x128xf32>
      %c0_11 = arith.constant 0 : index
      %c0_12 = arith.constant 0 : index
      %13 = vector.load %arg7[%c0_11, %c0_12] : memref<32x128xf32, #tpu.memory_space<vmem>>, vector<32x128xf32>
      tpu.vector_store %arg7[%c0_11, %c0_12], %12 {strides = array<i32>} : memref<32x128xf32, #tpu.memory_space<vmem>>, vector<32x128xf32>,
    } else {
    }
    %c0 = arith.constant 0 : index
    %c0_1 = arith.constant 0 : index
    %3 = vector.load %arg3[%c0, %c0_1] : memref<32x128xbf16, #tpu.memory_space<vmem>>, vector<32x128xbf16>
    %c0_2 = arith.constant 0 : index
    %c0_3 = arith.constant 0 : index
    %4 = vector.load %arg7[%c0_2, %c0_3] : memref<32x128xf32, #tpu.memory_space<vmem>>, vector<32x128xf32>
    %c0_4 = arith.constant 0 : index
    %c0_5 = arith.constant 0 : index
    %5 = vector.load %arg4[%c0_4, %c0_5] : memref<128x128xbf16, #tpu.memory_space<vmem>>, vector<128x128xbf16>
    %cst = arith.constant dense<0.000000e+00> : vector<32x128xf32>
    %6 = tpu.matmul %3, %5, %cst {dimension_numbers = #tpu.dot_dimension_numbers<[1], [0], [0], [1], [0, 0, 1, 1], [], []>} : vector<32x128xbf16>, vector<128x128xbf16>, vector<32x128xf32> -> vector<32x128xf32>
    %7 = arith.addf %4, %6 : vector<32x128xf32>
    %c0_6 = arith.constant 0 : index
    %c0_7 = arith.constant 0 : index
    %8 = vector.load %arg7[%c0_6, %c0_7] : memref<32x128xf32, #tpu.memory_space<vmem>>, vector<32x128xf32>
    tpu.vector_store %arg7[%c0_6, %c0_7], %7 {strides = array<i32>} : memref<32x128xf32, #tpu.memory_space<vmem>>, vector<32x128xf32>,
    %c0_i32_8 = arith.constant 0 : i32
    %9 = arith.cmpi eq, %arg2, %c0_i32_8 : i32
    %10 = arith.extui %9 : i1 to i32
    %c0_i32_9 = arith.constant 0 : i32
    %11 = arith.cmpi ne, %10, %c0_i32_9 : i32
    scf.if %11 {
      %c0_10 = arith.constant 0 : index
      %c0_11 = arith.constant 0 : index
      %12 = vector.load %arg7[%c0_10, %c0_11] : memref<32x128xf32, #tpu.memory_space<vmem>>, vector<32x128xf32>
      %c0_12 = arith.constant 0 : index
      %c0_13 = arith.constant 0 : index
      %13 = vector.load %arg5[%c0_12, %c0_13] : memref<1x128xf32, #tpu.memory_space<vmem>>, vector<1x128xf32>
      %14 = vector.broadcast %13 : vector<1x128xf32> to vector<32x128xf32>
      %15 = arith.addf %12, %14 : vector<32x128xf32>
      %c0_14 = arith.constant 0 : index
      %c0_15 = arith.constant 0 : index
      %16 = vector.load %arg6[%c0_14, %c0_15] : memref<32x128xf32, #tpu.memory_space<vmem>>, vector<32x128xf32>
      tpu.vector_store %arg6[%c0_14, %c0_15], %15 {strides = array<i32>} : memref<32x128xf32, #tpu.memory_space<vmem>>, vector<32x128xf32>,
    } else {
    }
    return
  }
  func.func @transform_0(%arg0: i32, %arg1: i32, %arg2: i32) -> (i32, i32) {
    %c0_i32 = arith.constant 0 : i32
    return %arg0, %arg2 : i32, i32
  }
  func.func @transform_1(%arg0: i32, %arg1: i32, %arg2: i32) -> (i32, i32) {
    %c0_i32 = arith.constant 0 : i32
    return %arg2, %arg1 : i32, i32
  }
  func.func @transform_2(%arg0: i32, %arg1: i32, %arg2: i32) -> (i32, i32) {
    %c0_i32 = arith.constant 0 : i32
    %c0_i32_0 = arith.constant 0 : i32
    return %c0_i32, %arg1 : i32, i32
  }
  func.func @transform_3(%arg0: i32, %arg1: i32, %arg2: i32) -> (i32, i32) {
    %c0_i32 = arith.constant 0 : i32
    return %arg0, %arg1 : i32, i32
  }
}

module attributes {stable_mosaic.version = 11 : i64} {
  func.func @_vq_kernel(%arg0: i32, %arg1: memref<32x128xf32, #tpu.memory_space<vmem>>, %arg2: memref<128x128xf32, #tpu.memory_space<vmem>>, %arg3: memref<1x128xf32, #tpu.memory_space<vmem>>, %arg4: memref<32x128xf32, #tpu.memory_space<vmem>>, %arg5: memref<1x1xf32, #tpu.memory_space<vmem>>, %arg6: memref<1x1xf32, #tpu.memory_space<vmem>>, %arg7: memref<1x1xf32, #tpu.memory_space<vmem>>, %arg8: memref<1x128xf32, #tpu.memory_space<vmem>>) attributes {dimension_semantics = [#tpu.dimension_semantics<arbitrary>], iteration_bounds = array<i64: 1>, scalar_prefetch = 0 : i64, scratch_operands = 2 : i64, tpu.core_type = #tpu.core_type<tc>, window_params = [{transform_indices = @transform_0, window_bounds = array<i64: 32, 128>}, {pipeline_mode = #tpu.pipeline_mode<synchronous>, transform_indices = @transform_1, window_bounds = array<i64: 128, 128>}, {pipeline_mode = #tpu.pipeline_mode<synchronous>, transform_indices = @transform_2, window_bounds = array<i64: 1, 128>}, {transform_indices = @transform_3, window_bounds = array<i64: 32, 128>}, {pipeline_mode = #tpu.pipeline_mode<synchronous>, transform_indices = @transform_4, window_bounds = array<i64: 1, 1>}, {pipeline_mode = #tpu.pipeline_mode<synchronous>, transform_indices = @transform_5, window_bounds = array<i64: 1, 1>}]} {
    %c0_i32 = arith.constant 0 : i32
    %0 = arith.cmpi eq, %arg0, %c0_i32 : i32
    %1 = arith.extui %0 : i1 to i32
    %c0_i32_0 = arith.constant 0 : i32
    %2 = arith.cmpi ne, %1, %c0_i32_0 : i32
    scf.if %2 {
      %cst_25 = arith.constant 0.000000e+00 : f32
      %56 = vector.broadcast %cst_25 : f32 to vector<1x1xf32>
      %c0_26 = arith.constant 0 : index
      %c0_27 = arith.constant 0 : index
      %57 = vector.load %arg7[%c0_26, %c0_27] : memref<1x1xf32, #tpu.memory_space<vmem>>, vector<1x1xf32>
      tpu.vector_store %arg7[%c0_26, %c0_27], %56 {strides = array<i32>} : memref<1x1xf32, #tpu.memory_space<vmem>>, vector<1x1xf32>,
      %cst_28 = arith.constant 0.000000e+00 : f32
      %58 = vector.broadcast %cst_28 : f32 to vector<1x128xf32>
      %c0_29 = arith.constant 0 : index
      %c0_30 = arith.constant 0 : index
      %59 = vector.load %arg8[%c0_29, %c0_30] : memref<1x128xf32, #tpu.memory_space<vmem>>, vector<1x128xf32>
      tpu.vector_store %arg8[%c0_29, %c0_30], %58 {strides = array<i32>} : memref<1x128xf32, #tpu.memory_space<vmem>>, vector<1x128xf32>,
    } else {
    }
    %c0 = arith.constant 0 : index
    %c0_1 = arith.constant 0 : index
    %3 = vector.load %arg1[%c0, %c0_1] : memref<32x128xf32, #tpu.memory_space<vmem>>, vector<32x128xf32>
    %c0_2 = arith.constant 0 : index
    %c0_3 = arith.constant 0 : index
    %4 = vector.load %arg2[%c0_2, %c0_3] : memref<128x128xf32, #tpu.memory_space<vmem>>, vector<128x128xf32>
    %cst = arith.constant dense<0.000000e+00> : vector<32x128xf32>
    %5 = tpu.matmul %3, %4, %cst {dimension_numbers = #tpu.dot_dimension_numbers<[1], [1], [0], [0], [0, 0, 1, 0], [], []>} : vector<32x128xf32>, vector<128x128xf32>, vector<32x128xf32> -> vector<32x128xf32>
    %c0_4 = arith.constant 0 : index
    %c0_5 = arith.constant 0 : index
    %6 = vector.load %arg3[%c0_4, %c0_5] : memref<1x128xf32, #tpu.memory_space<vmem>>, vector<1x128xf32>
    %cst_6 = arith.constant 2.000000e+00 : f32
    %7 = vector.broadcast %cst_6 : f32 to vector<32x128xf32>
    %8 = arith.mulf %7, %5 : vector<32x128xf32>
    %9 = vector.broadcast %6 : vector<1x128xf32> to vector<32x128xf32>
    %10 = arith.subf %9, %8 : vector<32x128xf32>
    %11 = tpu.iota {dimensions = array<i32: 1>} : vector<32x128xi32>
    %cst_7 = arith.constant dense<0x7F800000> : vector<32xf32>
    %12 = vector.multi_reduction <minimumf>, %10, %cst_7 [1] : vector<32x128xf32> to vector<32xf32>
    %13 = vector.shape_cast %12 : vector<32xf32> to vector<32x1xf32>
    %14 = vector.broadcast %13 : vector<32x1xf32> to vector<32x128xf32>
    %15 = arith.cmpf oeq, %10, %14 : vector<32x128xf32>
    %c128_i32 = arith.constant 128 : i32
    %16 = vector.broadcast %c128_i32 : i32 to vector<32x128xi32>
    %17 = arith.select %15, %11, %16 : vector<32x128xi1>, vector<32x128xi32>
    %cst_8 = arith.constant dense<2147483647> : vector<32xi32>
    %18 = vector.multi_reduction <minsi>, %17, %cst_8 [1] : vector<32x128xi32> to vector<32xi32>
    %19 = vector.shape_cast %18 : vector<32xi32> to vector<32x1xi32>
    %20 = vector.broadcast %19 : vector<32x1xi32> to vector<32x128xi32>
    %21 = arith.cmpi eq, %11, %20 : vector<32x128xi32>
    %22 = arith.extui %21 : vector<32x128xi1> to vector<32x128xi32>
    %23 = arith.sitofp %22 : vector<32x128xi32> to vector<32x128xf32>
    %cst_9 = arith.constant dense<0.000000e+00> : vector<32x128xf32>
    %24 = tpu.matmul %23, %4, %cst_9 {dimension_numbers = #tpu.dot_dimension_numbers<[1], [0], [0], [1], [0, 0, 1, 1], [], []>} : vector<32x128xf32>, vector<128x128xf32>, vector<32x128xf32> -> vector<32x128xf32>
    %c0_10 = arith.constant 0 : index
    %c0_11 = arith.constant 0 : index
    %25 = vector.load %arg4[%c0_10, %c0_11] : memref<32x128xf32, #tpu.memory_space<vmem>>, vector<32x128xf32>
    tpu.vector_store %arg4[%c0_10, %c0_11], %24 {strides = array<i32>} : memref<32x128xf32, #tpu.memory_space<vmem>>, vector<32x128xf32>,
    %26 = tpu.iota {dimensions = array<i32: 0>} : vector<32x1xi32>
    %c32_i32 = arith.constant 32 : i32
    %27 = arith.muli %arg0, %c32_i32 : i32
    %28 = vector.broadcast %27 : i32 to vector<32x1xi32>
    %29 = arith.addi %26, %28 : vector<32x1xi32>
    %c32_i32_12 = arith.constant 32 : i32
    %30 = vector.broadcast %c32_i32_12 : i32 to vector<32x1xi32>
    %31 = arith.cmpi slt, %29, %30 : vector<32x1xi32>
    %32 = arith.extui %31 : vector<32x1xi1> to vector<32x1xi32>
    %33 = arith.sitofp %32 : vector<32x1xi32> to vector<32x1xf32>
    %34 = arith.subf %24, %3 : vector<32x128xf32>
    %35 = vector.broadcast %33 : vector<32x1xf32> to vector<32x128xf32>
    %36 = arith.mulf %34, %35 : vector<32x128xf32>
    %c0_13 = arith.constant 0 : index
    %c0_14 = arith.constant 0 : index
    %37 = vector.load %arg7[%c0_13, %c0_14] : memref<1x1xf32, #tpu.memory_space<vmem>>, vector<1x1xf32>
    %38 = arith.mulf %36, %36 : vector<32x128xf32>
    %39 = vector.shape_cast %38 : vector<32x128xf32> to vector<1x32x128xf32>
    %cst_15 = arith.constant dense<0.000000e+00> : vector<1xf32>
    %40 = vector.multi_reduction <add>, %39, %cst_15 [1, 2] : vector<1x32x128xf32> to vector<1xf32>
    %41 = vector.shape_cast %40 : vector<1xf32> to vector<1x1x1xf32>
    %42 = vector.extract %41[0, 0, 0] : f32 from vector<1x1x1xf32>
    %43 = vector.broadcast %42 : f32 to vector<1x1xf32>
    %44 = arith.addf %37, %43 : vector<1x1xf32>
    %c0_16 = arith.constant 0 : index
    %c0_17 = arith.constant 0 : index
    %45 = vector.load %arg7[%c0_16, %c0_17] : memref<1x1xf32, #tpu.memory_space<vmem>>, vector<1x1xf32>
    tpu.vector_store %arg7[%c0_16, %c0_17], %44 {strides = array<i32>} : memref<1x1xf32, #tpu.memory_space<vmem>>, vector<1x1xf32>,
    %c0_18 = arith.constant 0 : index
    %c0_19 = arith.constant 0 : index
    %46 = vector.load %arg8[%c0_18, %c0_19] : memref<1x128xf32, #tpu.memory_space<vmem>>, vector<1x128xf32>
    %47 = vector.broadcast %33 : vector<32x1xf32> to vector<32x128xf32>
    %48 = arith.mulf %23, %47 : vector<32x128xf32>
    %cst_20 = arith.constant dense<0.000000e+00> : vector<128xf32>
    %49 = vector.multi_reduction <add>, %48, %cst_20 [0] : vector<32x128xf32> to vector<128xf32>
    %50 = vector.shape_cast %49 : vector<128xf32> to vector<1x128xf32>
    %51 = arith.addf %46, %50 : vector<1x128xf32>
    %c0_21 = arith.constant 0 : index
    %c0_22 = arith.constant 0 : index
    %52 = vector.load %arg8[%c0_21, %c0_22] : memref<1x128xf32, #tpu.memory_space<vmem>>, vector<1x128xf32>
    tpu.vector_store %arg8[%c0_21, %c0_22], %51 {strides = array<i32>} : memref<1x128xf32, #tpu.memory_space<vmem>>, vector<1x128xf32>,
    %c0_i32_23 = arith.constant 0 : i32
    %53 = arith.cmpi eq, %arg0, %c0_i32_23 : i32
    %54 = arith.extui %53 : i1 to i32
    %c0_i32_24 = arith.constant 0 : i32
    %55 = arith.cmpi ne, %54, %c0_i32_24 : i32
    scf.if %55 {
      %c0_25 = arith.constant 0 : index
      %c0_26 = arith.constant 0 : index
      %56 = vector.load %arg7[%c0_25, %c0_26] : memref<1x1xf32, #tpu.memory_space<vmem>>, vector<1x1xf32>
      %cst_27 = arith.constant 1.250000e+00 : f32
      %57 = vector.broadcast %cst_27 : f32 to vector<1x1xf32>
      %58 = arith.mulf %57, %56 : vector<1x1xf32>
      %cst_28 = arith.constant 3.906250e-03 : f32
      %59 = vector.broadcast %cst_28 : f32 to vector<1x1xf32>
      %60 = arith.mulf %58, %59 : vector<1x1xf32>
      %c0_29 = arith.constant 0 : index
      %c0_30 = arith.constant 0 : index
      %61 = vector.load %arg5[%c0_29, %c0_30] : memref<1x1xf32, #tpu.memory_space<vmem>>, vector<1x1xf32>
      tpu.vector_store %arg5[%c0_29, %c0_30], %60 {strides = array<i32>} : memref<1x1xf32, #tpu.memory_space<vmem>>, vector<1x1xf32>,
      %c0_31 = arith.constant 0 : index
      %c0_32 = arith.constant 0 : index
      %62 = vector.load %arg8[%c0_31, %c0_32] : memref<1x128xf32, #tpu.memory_space<vmem>>, vector<1x128xf32>
      %cst_33 = arith.constant 3.125000e-02 : f32
      %63 = vector.broadcast %cst_33 : f32 to vector<1x128xf32>
      %64 = arith.mulf %62, %63 : vector<1x128xf32>
      %cst_34 = arith.constant 1.000000e-10 : f32
      %65 = vector.broadcast %cst_34 : f32 to vector<1x128xf32>
      %66 = arith.addf %64, %65 : vector<1x128xf32>
      %67 = math.log %66 : vector<1x128xf32>
      %68 = arith.mulf %64, %67 : vector<1x128xf32>
      %cst_35 = arith.constant dense<0.000000e+00> : vector<1xf32>
      %69 = vector.multi_reduction <add>, %68, %cst_35 [1] : vector<1x128xf32> to vector<1xf32>
      %70 = vector.shape_cast %69 : vector<1xf32> to vector<1x1xf32>
      %cst_36 = arith.constant 0.000000e+00 : f32
      %71 = vector.broadcast %cst_36 : f32 to vector<1x1xf32>
      %72 = arith.subf %71, %70 : vector<1x1xf32>
      %73 = math.exp %72 : vector<1x1xf32>
      %c0_37 = arith.constant 0 : index
      %c0_38 = arith.constant 0 : index
      %74 = vector.load %arg6[%c0_37, %c0_38] : memref<1x1xf32, #tpu.memory_space<vmem>>, vector<1x1xf32>
      tpu.vector_store %arg6[%c0_37, %c0_38], %73 {strides = array<i32>} : memref<1x1xf32, #tpu.memory_space<vmem>>, vector<1x1xf32>,
    } else {
    }
    return
  }
  func.func @transform_0(%arg0: i32) -> (i32, i32) {
    %c0_i32 = arith.constant 0 : i32
    %c0_i32_0 = arith.constant 0 : i32
    return %arg0, %c0_i32 : i32, i32
  }
  func.func @transform_1(%arg0: i32) -> (i32, i32) {
    %c0_i32 = arith.constant 0 : i32
    %c0_i32_0 = arith.constant 0 : i32
    %c0_i32_1 = arith.constant 0 : i32
    return %c0_i32, %c0_i32_0 : i32, i32
  }
  func.func @transform_2(%arg0: i32) -> (i32, i32) {
    %c0_i32 = arith.constant 0 : i32
    %c0_i32_0 = arith.constant 0 : i32
    %c0_i32_1 = arith.constant 0 : i32
    return %c0_i32, %c0_i32_0 : i32, i32
  }
  func.func @transform_3(%arg0: i32) -> (i32, i32) {
    %c0_i32 = arith.constant 0 : i32
    %c0_i32_0 = arith.constant 0 : i32
    return %arg0, %c0_i32 : i32, i32
  }
  func.func @transform_4(%arg0: i32) -> (i32, i32) {
    %c0_i32 = arith.constant 0 : i32
    %c0_i32_0 = arith.constant 0 : i32
    %c0_i32_1 = arith.constant 0 : i32
    return %c0_i32, %c0_i32_0 : i32, i32
  }
  func.func @transform_5(%arg0: i32) -> (i32, i32) {
    %c0_i32 = arith.constant 0 : i32
    %c0_i32_0 = arith.constant 0 : i32
    %c0_i32_1 = arith.constant 0 : i32
    return %c0_i32, %c0_i32_0 : i32, i32
  }
}

module attributes {stable_mosaic.version = 11 : i64} {
  func.func @_mm_kernel(%arg0: i32, %arg1: i32, %arg2: i32, %arg3: memref<32x384xbf16, #tpu.memory_space<vmem>>, %arg4: memref<384x128xbf16, #tpu.memory_space<vmem>>, %arg5: memref<1x128xf32, #tpu.memory_space<vmem>>, %arg6: memref<32x128xf32, #tpu.memory_space<vmem>>, %arg7: memref<32x128xf32, #tpu.memory_space<vmem>>) attributes {dimension_semantics = [#tpu.dimension_semantics<parallel>, #tpu.dimension_semantics<parallel>, #tpu.dimension_semantics<arbitrary>], iteration_bounds = array<i64: 1, 1, 1>, scalar_prefetch = 0 : i64, scratch_operands = 1 : i64, tpu.core_type = #tpu.core_type<tc>, window_params = [{transform_indices = @transform_0, window_bounds = array<i64: 32, 384>}, {transform_indices = @transform_1, window_bounds = array<i64: 384, 128>}, {transform_indices = @transform_2, window_bounds = array<i64: 1, 128>}, {transform_indices = @transform_3, window_bounds = array<i64: 32, 128>}]} {
    %c0_i32 = arith.constant 0 : i32
    %0 = arith.cmpi eq, %arg2, %c0_i32 : i32
    %1 = arith.extui %0 : i1 to i32
    %c0_i32_0 = arith.constant 0 : i32
    %2 = arith.cmpi ne, %1, %c0_i32_0 : i32
    scf.if %2 {
      %cst_10 = arith.constant 0.000000e+00 : f32
      %12 = vector.broadcast %cst_10 : f32 to vector<32x128xf32>
      %c0_11 = arith.constant 0 : index
      %c0_12 = arith.constant 0 : index
      %13 = vector.load %arg7[%c0_11, %c0_12] : memref<32x128xf32, #tpu.memory_space<vmem>>, vector<32x128xf32>
      tpu.vector_store %arg7[%c0_11, %c0_12], %12 {strides = array<i32>} : memref<32x128xf32, #tpu.memory_space<vmem>>, vector<32x128xf32>,
    } else {
    }
    %c0 = arith.constant 0 : index
    %c0_1 = arith.constant 0 : index
    %3 = vector.load %arg3[%c0, %c0_1] : memref<32x384xbf16, #tpu.memory_space<vmem>>, vector<32x384xbf16>
    %c0_2 = arith.constant 0 : index
    %c0_3 = arith.constant 0 : index
    %4 = vector.load %arg7[%c0_2, %c0_3] : memref<32x128xf32, #tpu.memory_space<vmem>>, vector<32x128xf32>
    %c0_4 = arith.constant 0 : index
    %c0_5 = arith.constant 0 : index
    %5 = vector.load %arg4[%c0_4, %c0_5] : memref<384x128xbf16, #tpu.memory_space<vmem>>, vector<384x128xbf16>
    %cst = arith.constant dense<0.000000e+00> : vector<32x128xf32>
    %6 = tpu.matmul %3, %5, %cst {dimension_numbers = #tpu.dot_dimension_numbers<[1], [0], [0], [1], [0, 0, 1, 1], [], []>} : vector<32x384xbf16>, vector<384x128xbf16>, vector<32x128xf32> -> vector<32x128xf32>
    %7 = arith.addf %4, %6 : vector<32x128xf32>
    %c0_6 = arith.constant 0 : index
    %c0_7 = arith.constant 0 : index
    %8 = vector.load %arg7[%c0_6, %c0_7] : memref<32x128xf32, #tpu.memory_space<vmem>>, vector<32x128xf32>
    tpu.vector_store %arg7[%c0_6, %c0_7], %7 {strides = array<i32>} : memref<32x128xf32, #tpu.memory_space<vmem>>, vector<32x128xf32>,
    %c0_i32_8 = arith.constant 0 : i32
    %9 = arith.cmpi eq, %arg2, %c0_i32_8 : i32
    %10 = arith.extui %9 : i1 to i32
    %c0_i32_9 = arith.constant 0 : i32
    %11 = arith.cmpi ne, %10, %c0_i32_9 : i32
    scf.if %11 {
      %c0_10 = arith.constant 0 : index
      %c0_11 = arith.constant 0 : index
      %12 = vector.load %arg7[%c0_10, %c0_11] : memref<32x128xf32, #tpu.memory_space<vmem>>, vector<32x128xf32>
      %c0_12 = arith.constant 0 : index
      %c0_13 = arith.constant 0 : index
      %13 = vector.load %arg5[%c0_12, %c0_13] : memref<1x128xf32, #tpu.memory_space<vmem>>, vector<1x128xf32>
      %14 = vector.broadcast %13 : vector<1x128xf32> to vector<32x128xf32>
      %15 = arith.addf %12, %14 : vector<32x128xf32>
      %cst_14 = arith.constant 0.000000e+00 : f32
      %16 = vector.broadcast %cst_14 : f32 to vector<32x128xf32>
      %17 = arith.maximumf %15, %16 : vector<32x128xf32>
      %c0_15 = arith.constant 0 : index
      %c0_16 = arith.constant 0 : index
      %18 = vector.load %arg6[%c0_15, %c0_16] : memref<32x128xf32, #tpu.memory_space<vmem>>, vector<32x128xf32>
      tpu.vector_store %arg6[%c0_15, %c0_16], %17 {strides = array<i32>} : memref<32x128xf32, #tpu.memory_space<vmem>>, vector<32x128xf32>,
    } else {
    }
    return
  }
  func.func @transform_0(%arg0: i32, %arg1: i32, %arg2: i32) -> (i32, i32) {
    %c0_i32 = arith.constant 0 : i32
    return %arg0, %arg2 : i32, i32
  }
  func.func @transform_1(%arg0: i32, %arg1: i32, %arg2: i32) -> (i32, i32) {
    %c0_i32 = arith.constant 0 : i32
    return %arg2, %arg1 : i32, i32
  }
  func.func @transform_2(%arg0: i32, %arg1: i32, %arg2: i32) -> (i32, i32) {
    %c0_i32 = arith.constant 0 : i32
    %c0_i32_0 = arith.constant 0 : i32
    return %c0_i32, %arg1 : i32, i32
  }
  func.func @transform_3(%arg0: i32, %arg1: i32, %arg2: i32) -> (i32, i32) {
    %c0_i32 = arith.constant 0 : i32
    return %arg0, %arg1 : i32, i32
  }
}

module attributes {stable_mosaic.version = 11 : i64} {
  func.func @_mm_kernel(%arg0: i32, %arg1: i32, %arg2: i32, %arg3: memref<128x256xbf16, #tpu.memory_space<vmem>>, %arg4: memref<256x128xbf16, #tpu.memory_space<vmem>>, %arg5: memref<1x128xf32, #tpu.memory_space<vmem>>, %arg6: memref<128x128xf32, #tpu.memory_space<vmem>>, %arg7: memref<128x128xf32, #tpu.memory_space<vmem>>) attributes {dimension_semantics = [#tpu.dimension_semantics<parallel>, #tpu.dimension_semantics<parallel>, #tpu.dimension_semantics<arbitrary>], iteration_bounds = array<i64: 1, 1, 1>, scalar_prefetch = 0 : i64, scratch_operands = 1 : i64, tpu.core_type = #tpu.core_type<tc>, window_params = [{transform_indices = @transform_0, window_bounds = array<i64: 128, 256>}, {transform_indices = @transform_1, window_bounds = array<i64: 256, 128>}, {transform_indices = @transform_2, window_bounds = array<i64: 1, 128>}, {transform_indices = @transform_3, window_bounds = array<i64: 128, 128>}]} {
    %c0_i32 = arith.constant 0 : i32
    %0 = arith.cmpi eq, %arg2, %c0_i32 : i32
    %1 = arith.extui %0 : i1 to i32
    %c0_i32_0 = arith.constant 0 : i32
    %2 = arith.cmpi ne, %1, %c0_i32_0 : i32
    scf.if %2 {
      %cst_10 = arith.constant 0.000000e+00 : f32
      %12 = vector.broadcast %cst_10 : f32 to vector<128x128xf32>
      %c0_11 = arith.constant 0 : index
      %c0_12 = arith.constant 0 : index
      %13 = vector.load %arg7[%c0_11, %c0_12] : memref<128x128xf32, #tpu.memory_space<vmem>>, vector<128x128xf32>
      tpu.vector_store %arg7[%c0_11, %c0_12], %12 {strides = array<i32>} : memref<128x128xf32, #tpu.memory_space<vmem>>, vector<128x128xf32>,
    } else {
    }
    %c0 = arith.constant 0 : index
    %c0_1 = arith.constant 0 : index
    %3 = vector.load %arg3[%c0, %c0_1] : memref<128x256xbf16, #tpu.memory_space<vmem>>, vector<128x256xbf16>
    %c0_2 = arith.constant 0 : index
    %c0_3 = arith.constant 0 : index
    %4 = vector.load %arg7[%c0_2, %c0_3] : memref<128x128xf32, #tpu.memory_space<vmem>>, vector<128x128xf32>
    %c0_4 = arith.constant 0 : index
    %c0_5 = arith.constant 0 : index
    %5 = vector.load %arg4[%c0_4, %c0_5] : memref<256x128xbf16, #tpu.memory_space<vmem>>, vector<256x128xbf16>
    %cst = arith.constant dense<0.000000e+00> : vector<128x128xf32>
    %6 = tpu.matmul %3, %5, %cst {dimension_numbers = #tpu.dot_dimension_numbers<[1], [0], [0], [1], [0, 0, 1, 1], [], []>} : vector<128x256xbf16>, vector<256x128xbf16>, vector<128x128xf32> -> vector<128x128xf32>
    %7 = arith.addf %4, %6 : vector<128x128xf32>
    %c0_6 = arith.constant 0 : index
    %c0_7 = arith.constant 0 : index
    %8 = vector.load %arg7[%c0_6, %c0_7] : memref<128x128xf32, #tpu.memory_space<vmem>>, vector<128x128xf32>
    tpu.vector_store %arg7[%c0_6, %c0_7], %7 {strides = array<i32>} : memref<128x128xf32, #tpu.memory_space<vmem>>, vector<128x128xf32>,
    %c0_i32_8 = arith.constant 0 : i32
    %9 = arith.cmpi eq, %arg2, %c0_i32_8 : i32
    %10 = arith.extui %9 : i1 to i32
    %c0_i32_9 = arith.constant 0 : i32
    %11 = arith.cmpi ne, %10, %c0_i32_9 : i32
    scf.if %11 {
      %c0_10 = arith.constant 0 : index
      %c0_11 = arith.constant 0 : index
      %12 = vector.load %arg7[%c0_10, %c0_11] : memref<128x128xf32, #tpu.memory_space<vmem>>, vector<128x128xf32>
      %c0_12 = arith.constant 0 : index
      %c0_13 = arith.constant 0 : index
      %13 = vector.load %arg5[%c0_12, %c0_13] : memref<1x128xf32, #tpu.memory_space<vmem>>, vector<1x128xf32>
      %14 = vector.broadcast %13 : vector<1x128xf32> to vector<128x128xf32>
      %15 = arith.addf %12, %14 : vector<128x128xf32>
      %c0_14 = arith.constant 0 : index
      %c0_15 = arith.constant 0 : index
      %16 = vector.load %arg6[%c0_14, %c0_15] : memref<128x128xf32, #tpu.memory_space<vmem>>, vector<128x128xf32>
      tpu.vector_store %arg6[%c0_14, %c0_15], %15 {strides = array<i32>} : memref<128x128xf32, #tpu.memory_space<vmem>>, vector<128x128xf32>,
    } else {
    }
    return
  }
  func.func @transform_0(%arg0: i32, %arg1: i32, %arg2: i32) -> (i32, i32) {
    %c0_i32 = arith.constant 0 : i32
    return %arg0, %arg2 : i32, i32
  }
  func.func @transform_1(%arg0: i32, %arg1: i32, %arg2: i32) -> (i32, i32) {
    %c0_i32 = arith.constant 0 : i32
    return %arg2, %arg1 : i32, i32
  }
  func.func @transform_2(%arg0: i32, %arg1: i32, %arg2: i32) -> (i32, i32) {
    %c0_i32 = arith.constant 0 : i32
    %c0_i32_0 = arith.constant 0 : i32
    return %c0_i32, %arg1 : i32, i32
  }
  func.func @transform_3(%arg0: i32, %arg1: i32, %arg2: i32) -> (i32, i32) {
    %c0_i32 = arith.constant 0 : i32
    return %arg0, %arg1 : i32, i32
  }
}

</mosaic_0001>

<bundles_post_ra>
// kernel: _lambda_.16
= control target key start
LH: loop header
LB: loop body
LE: loop exit
PB: predicated region body
PF: predicated region fallthrough
CT: control target
= control target key end

     0   :  { %s602_s1 = inlined_call_operand.vmem [shape: bf16[128,128], index: 1, kind: input, shape index: {}]   ;;  %s603_s0 = inlined_call_operand.vmem [shape: bf16[128,128], index: 0, kind: input, shape index: {}]   ;;  %s604_s2 = inlined_call_operand.vmem [shape: f32[1,128], index: 2, kind: input, shape index: {}]   ;;  %s605_s3 = inlined_call_operand.vmem [shape: f32[128,128], index: 3, kind: output, shape index: {}]  }
   0x1   :  { %v467_v0 = vld [vmem:[%s602_s1 + $0x38] sm:$0xff]   ;;  %v468_v1 = vld [vmem:[%s602_s1 + $0x30] sm:$0xff]   ;;  %v469_v2 = vld [vmem:[%s602_s1 + $0x28] sm:$0xff]  }
   0x2   :  { %419 = vmatprep.subr.bf16.mxu0 %v467_v0  ;;  %451 = vmatprep.subr.bf16.mxu1 %v467_v0  ;;  %v470_v3 = vld [vmem:[%s602_s1 + $0x20] sm:$0xff]   ;;  %v471_v6 = vld [vmem:[%s602_s1 + $0x18] sm:$0xff]   ;;  %v472_v7 = vld [vmem:[%s602_s1 + $0x10] sm:$0xff]  }
   0x3   :  { %420 = vmatpush3.bf16.msra.mxu0 %v467_v0  ;;  %459 = vmatpush3.bf16.msra.mxu1 %v467_v0  ;;  %v475_v4 = vld [vmem:[%s603_s0] sm:$0xff]   ;;  %v473_v8 = vld [vmem:[%s602_s1 + $0x8] sm:$0xff]   ;;  %v479_v12 = vld [vmem:[%s603_s0 + $0x10] sm:$0xff]  }
   0x4   :  { %421 = vmatprep.subr.bf16.mxu0 %v468_v1  ;;  %452 = vmatprep.subr.bf16.mxu1 %v468_v1  ;;  %v476_v5 = vld [vmem:[%s603_s0 + $0x20] sm:$0xff]   ;;  %v477_v10 = vld [vmem:[%s603_s0 + $0x8] sm:$0xff]   ;;  %v480_v13 = vld [vmem:[%s603_s0 + $0x30] sm:$0xff]  }
   0x5   :  { %435 = vmatprep.mubr.bf16.mxu0 %v475_v4  ;;  %443 = vmatprep.mubr.bf16.mxu1 %v476_v5  ;;  %v474_v9 = vld [vmem:[%s602_s1] sm:$0xff]   ;;  %v478_v11 = vld [vmem:[%s603_s0 + $0x28] sm:$0xff]   ;;  %v481_v14 = vld [vmem:[%s603_s0 + $0x18] sm:$0xff]  }
   0x6   :  { %v482_v15 = vld [vmem:[%s603_s0 + $0x38] sm:$0xff]   ;;  %v402_v16 = vld [vmem:[%s604_s2] ss:$0 sm:$0xff] }
   0x7   :  { %422 = vmatpush3.bf16.msra.mxu0 %v468_v1  ;;  %460 = vmatpush3.bf16.msra.mxu1 %v468_v1 }
   0x8   :  { %423 = vmatprep.subr.bf16.mxu0 %v469_v2  ;;  %453 = vmatprep.subr.bf16.mxu1 %v469_v2 }
   0xb   :  { %424 = vmatpush3.bf16.msra.mxu0 %v469_v2  ;;  %461 = vmatpush3.bf16.msra.mxu1 %v469_v2 }
   0xc   :  { %425 = vmatprep.subr.bf16.mxu0 %v470_v3  ;;  %454 = vmatprep.subr.bf16.mxu1 %v470_v3 }
   0xf   :  { %426 = vmatpush3.bf16.msra.mxu0 %v470_v3  ;;  %462 = vmatpush3.bf16.msra.mxu1 %v470_v3 }
  0x10   :  { %427 = vmatprep.subr.bf16.mxu0 %v471_v6  ;;  %455 = vmatprep.subr.bf16.mxu1 %v471_v6 }
  0x13   :  { %428 = vmatpush3.bf16.msra.mxu0 %v471_v6  ;;  %463 = vmatpush3.bf16.msra.mxu1 %v471_v6 }
  0x14   :  { %429 = vmatprep.subr.bf16.mxu0 %v472_v7  ;;  %456 = vmatprep.subr.bf16.mxu1 %v472_v7 }
  0x17   :  { %430 = vmatpush3.bf16.msra.mxu0 %v472_v7  ;;  %464 = vmatpush3.bf16.msra.mxu1 %v472_v7 }
  0x18   :  { %431 = vmatprep.subr.bf16.mxu0 %v473_v8  ;;  %457 = vmatprep.subr.bf16.mxu1 %v473_v8 }
  0x1b   :  { %432 = vmatpush3.bf16.msra.mxu0 %v473_v8  ;;  %465 = vmatpush3.bf16.msra.mxu1 %v473_v8 }
  0x1c   :  { %433 = vmatprep.subr.bf16.mxu0 %v474_v9  ;;  %458 = vmatprep.subr.bf16.mxu1 %v474_v9 }
  0x1f   :  { %434 = vmatpush3.bf16.msra.mxu0 %v474_v9  ;;  %466 = vmatpush3.bf16.msra.mxu1 %v474_v9 }
  0x22   :  { %436 = vmatmul.mubr.bf16.vlgmr.msra.gmra.mxu0 %v477_v10  ;;  %444 = vmatmul.mubr.bf16.vlgmr.msra.gmra.mxu1 %v478_v11 }
  0x23   :  { %439 = vmatprep.mubr.bf16.mxu0 %v479_v12  ;;  %447 = vmatprep.mubr.bf16.mxu1 %v480_v13 }
  0x2a   :  { %440 = vmatmul.mubr.bf16.gmra.mxu0 %v481_v14  ;;  %448 = vmatmul.mubr.bf16.gmra.mxu1 %v482_v15 }
  0xe2   :  { %v437_v17 = vpop.f32.mrf.mxu0  ;;  %v445_v18 = vpop.f32.mrf.mxu1 }
  0xe3   :  { %v336_v19 = vadd.f32 %v437_v17, %v402_v16  ;;  %v344_v20 = vadd.f32 %v445_v18, %v402_v16 }
  0xe4   :  { %v213_v21 = vpop.f32.mrf.mxu0  ;;  %v245_v22 = vpop.f32.mrf.mxu1 }
  0xe5   :  { %v352_v23 = vmax.f32 %v336_v19, 0.0  ;;  %v360_v24 = vmax.f32 %v344_v20, 0.0  ;;  %v334_v25 = vadd.f32 %v402_v16, %v213_v21  ;;  %v342_v26 = vadd.f32 %v402_v16, %v245_v22 }
  0xe6   :  { %v438_v27 = vpop.f32.mrf.mxu0  ;;  %v446_v28 = vpop.f32.mrf.mxu1 }
  0xe7   :  { %368 = vst [vmem:[%s605_s3 + $0x10] sm:$0xff] %v352_v23  ;;  %376 = vst [vmem:[%s605_s3 + $0x50] sm:$0xff] %v360_v24  ;;  %v350_v29 = vmax.f32 %v334_v25, 0.0  ;;  %v358_v30 = vmax.f32 %v342_v26, 0.0  ;;  %v337_v31 = vadd.f32 %v438_v27, %v402_v16  ;;  %v345_v32 = vadd.f32 %v446_v28, %v402_v16 }
  0xe8   :  { %v216_v33 = vpop.f32.mrf.mxu0  ;;  %v248_v34 = vpop.f32.mrf.mxu1 }
  0xe9   :  { %366 = vst [vmem:[%s605_s3] sm:$0xff] %v350_v29  ;;  %374 = vst [vmem:[%s605_s3 + $0x40] sm:$0xff] %v358_v30  ;;  %v353_v35 = vmax.f32 %v337_v31, 0.0  ;;  %v361_v36 = vmax.f32 %v345_v32, 0.0  ;;  %v335_v37 = vadd.f32 %v402_v16, %v216_v33  ;;  %v343_v38 = vadd.f32 %v402_v16, %v248_v34 }
  0xea   :  { %v441_v39 = vpop.f32.mrf.mxu0  ;;  %v449_v40 = vpop.f32.mrf.mxu1 }
  0xeb   :  { %369 = vst [vmem:[%s605_s3 + $0x18] sm:$0xff] %v353_v35  ;;  %377 = vst [vmem:[%s605_s3 + $0x58] sm:$0xff] %v361_v36  ;;  %v351_v41 = vmax.f32 %v335_v37, 0.0  ;;  %v359_v42 = vmax.f32 %v343_v38, 0.0  ;;  %v340_v43 = vadd.f32 %v441_v39, %v402_v16  ;;  %v348_v44 = vadd.f32 %v449_v40, %v402_v16 }
  0xec   :  { %v229_v45 = vpop.f32.mrf.mxu0  ;;  %v261_v46 = vpop.f32.mrf.mxu1 }
  0xed   :  { %367 = vst [vmem:[%s605_s3 + $0x8] sm:$0xff] %v351_v41  ;;  %375 = vst [vmem:[%s605_s3 + $0x48] sm:$0xff] %v359_v42  ;;  %v356_v47 = vmax.f32 %v340_v43, 0.0  ;;  %v364_v48 = vmax.f32 %v348_v44, 0.0  ;;  %v338_v49 = vadd.f32 %v402_v16, %v229_v45  ;;  %v346_v50 = vadd.f32 %v402_v16, %v261_v46 }
  0xee   :  { %v442_v51 = vpop.f32.mrf.mxu0  ;;  %v450_v52 = vpop.f32.mrf.mxu1 }
  0xef   :  { %372 = vst [vmem:[%s605_s3 + $0x30] sm:$0xff] %v356_v47  ;;  %380 = vst [vmem:[%s605_s3 + $0x70] sm:$0xff] %v364_v48  ;;  %v354_v53 = vmax.f32 %v338_v49, 0.0  ;;  %v362_v54 = vmax.f32 %v346_v50, 0.0  ;;  %v341_v55 = vadd.f32 %v442_v51, %v402_v16  ;;  %v349_v56 = vadd.f32 %v450_v52, %v402_v16 }
  0xf0   :  { %v232_v57 = vpop.f32.mrf.mxu0  ;;  %v264_v58 = vpop.f32.mrf.mxu1 }
  0xf1   :  { %370 = vst [vmem:[%s605_s3 + $0x20] sm:$0xff] %v354_v53  ;;  %378 = vst [vmem:[%s605_s3 + $0x60] sm:$0xff] %v362_v54  ;;  %v357_v59 = vmax.f32 %v341_v55, 0.0  ;;  %v365_v60 = vmax.f32 %v349_v56, 0.0  ;;  %v339_v61 = vadd.f32 %v402_v16, %v232_v57  ;;  %v347_v62 = vadd.f32 %v402_v16, %v264_v58 }
  0xf3   :  { %373 = vst [vmem:[%s605_s3 + $0x38] sm:$0xff] %v357_v59  ;;  %381 = vst [vmem:[%s605_s3 + $0x78] sm:$0xff] %v365_v60  ;;  %v355_v63 = vmax.f32 %v339_v61, 0.0  ;;  %v363_v0 = vmax.f32 %v347_v62, 0.0 }
  0xf5   :  { %371 = vst [vmem:[%s605_s3 + $0x28] sm:$0xff] %v355_v63  ;;  %379 = vst [vmem:[%s605_s3 + $0x68] sm:$0xff] %v363_v0 }

// kernel: _lambda_.17
= control target key start
LH: loop header
LB: loop body
LE: loop exit
PB: predicated region body
PF: predicated region fallthrough
CT: control target
= control target key end

     0   :  { %s448_s1 = inlined_call_operand.vmem [shape: bf16[256,128], index: 1, kind: input, shape index: {}]   ;;  %s449_s0 = inlined_call_operand.vmem [shape: bf16[32,256], index: 0, kind: input, shape index: {}]   ;;  %s450_s2 = inlined_call_operand.vmem [shape: f32[1,128], index: 2, kind: input, shape index: {}]   ;;  %s451_s3 = inlined_call_operand.vmem [shape: f32[32,128], index: 3, kind: output, shape index: {}]  }
   0x1   :  { %v331_v0 = vld [vmem:[%s448_s1 + $0x78] sm:$0xff]   ;;  %v333_v2 = vld [vmem:[%s448_s1 + $0x70] sm:$0xff]   ;;  %v335_v4 = vld [vmem:[%s448_s1 + $0x68] sm:$0xff]  }
   0x2   :  { %v332_v1 = vld [vmem:[%s448_s1 + $0x38] sm:$0xff]   ;;  %287 = vmatprep.subr.bf16.mxu0 %v331_v0  ;;  %315 = vmatprep.subr.bf16.mxu1 %v331_v0  ;;  %v334_v3 = vld [vmem:[%s448_s1 + $0x30] sm:$0xff]   ;;  %v336_v5 = vld [vmem:[%s448_s1 + $0x28] sm:$0xff]  }
   0x3   :  { %288 = vmatpush3.bf16.msra.mxu0 %v332_v1  ;;  %323 = vmatpush3.bf16.msra.mxu1 %v332_v1  ;;  %v337_v6 = vld [vmem:[%s448_s1 + $0x60] sm:$0xff]   ;;  %v339_v8 = vld [vmem:[%s448_s1 + $0x58] sm:$0xff]   ;;  %v341_v10 = vld [vmem:[%s448_s1 + $0x50] sm:$0xff]  }
   0x4   :  { %289 = vmatprep.subr.bf16.mxu0 %v333_v2  ;;  %316 = vmatprep.subr.bf16.mxu1 %v333_v2  ;;  %v338_v7 = vld [vmem:[%s448_s1 + $0x20] sm:$0xff]   ;;  %v340_v9 = vld [vmem:[%s448_s1 + $0x18] sm:$0xff]   ;;  %v342_v13 = vld [vmem:[%s448_s1 + $0x10] sm:$0xff]  }
   0x5   :  { %v349_v11 = vld [vmem:[%s449_s0 + $0x4] ss:$8 sps:$4 sm:$0xff]   ;;  %v352_v12 = vld [vmem:[%s449_s0 + $0x14] ss:$8 sps:$4 sm:$0xff]   ;;  %v347_v18 = vld [vmem:[%s449_s0] ss:$8 sps:$4 sm:$0xff]  }
   0x6   :  { %v343_v14 = vld [vmem:[%s448_s1 + $0x48] sm:$0xff]   ;;  %211 = vmatprep.mubr.bf16.mxu0 %v349_v11  ;;  %219 = vmatprep.mubr.bf16.mxu1 %v352_v12  ;;  %v345_v16 = vld [vmem:[%s448_s1 + $0x40] sm:$0xff]   ;;  %v350_v19 = vld [vmem:[%s449_s0 + $0x10] ss:$8 sps:$4 sm:$0xff]  }
   0x7   :  { %290 = vmatpush3.bf16.msra.mxu0 %v334_v3  ;;  %324 = vmatpush3.bf16.msra.mxu1 %v334_v3  ;;  %v344_v15 = vld [vmem:[%s448_s1 + $0x8] sm:$0xff]   ;;  %v346_v17 = vld [vmem:[%s448_s1] sm:$0xff]  }
   0x8   :  { %291 = vmatprep.subr.bf16.mxu0 %v335_v4  ;;  %317 = vmatprep.subr.bf16.mxu1 %v335_v4  ;;  %v286_v23 = vld [vmem:[%s450_s2] ss:$0 sm:$0xff] }
   0xb   :  { %292 = vmatpush3.bf16.msra.mxu0 %v336_v5  ;;  %325 = vmatpush3.bf16.msra.mxu1 %v336_v5 }
   0xc   :  { %293 = vmatprep.subr.bf16.mxu0 %v337_v6  ;;  %318 = vmatprep.subr.bf16.mxu1 %v337_v6 }
   0xf   :  { %294 = vmatpush3.bf16.msra.mxu0 %v338_v7  ;;  %326 = vmatpush3.bf16.msra.mxu1 %v338_v7 }
  0x10   :  { %295 = vmatprep.subr.bf16.mxu0 %v339_v8  ;;  %319 = vmatprep.subr.bf16.mxu1 %v339_v8 }
  0x13   :  { %296 = vmatpush3.bf16.msra.mxu0 %v340_v9  ;;  %327 = vmatpush3.bf16.msra.mxu1 %v340_v9 }
  0x14   :  { %297 = vmatprep.subr.bf16.mxu0 %v341_v10  ;;  %320 = vmatprep.subr.bf16.mxu1 %v341_v10 }
  0x17   :  { %298 = vmatpush3.bf16.msra.mxu0 %v342_v13  ;;  %328 = vmatpush3.bf16.msra.mxu1 %v342_v13 }
  0x18   :  { %299 = vmatprep.subr.bf16.mxu0 %v343_v14  ;;  %321 = vmatprep.subr.bf16.mxu1 %v343_v14 }
  0x1b   :  { %300 = vmatpush3.bf16.msra.mxu0 %v344_v15  ;;  %329 = vmatpush3.bf16.msra.mxu1 %v344_v15 }
  0x1c   :  { %301 = vmatprep.subr.bf16.mxu0 %v345_v16  ;;  %322 = vmatprep.subr.bf16.mxu1 %v345_v16 }
  0x1f   :  { %302 = vmatpush3.bf16.msra.mxu0 %v346_v17  ;;  %330 = vmatpush3.bf16.msra.mxu1 %v346_v17 }
  0x22   :  { %212 = vmatmul.mubr.bf16.vlgmr.msra.gmra.mxu0 %v347_v18  ;;  %220 = vmatmul.mubr.bf16.vlgmr.msra.gmra.mxu1 %v350_v19 }
  0xe2   :  { %v303_v20 = vpop.f32.mrf.mxu0  ;;  %v309_v21 = vpop.f32.mrf.mxu1 }
  0xe4   :  { %v304_v22 = vpop.f32.mrf.mxu0  ;;  %v310_v24 = vpop.f32.mrf.mxu1 }
  0xe5   :  { %v305_v25 = vadd.f32 %v304_v22, %v303_v20  ;;  %v311_v26 = vadd.f32 %v310_v24, %v309_v21 }
  0xe6   :  { %v306_v27 = vpop.f32.mrf.mxu0  ;;  %v312_v28 = vpop.f32.mrf.mxu1 }
  0xe7   :  { %v250_v29 = vadd.f32 %v305_v25, %v286_v23  ;;  %v252_v30 = vadd.f32 %v311_v26, %v286_v23 }
  0xe8   :  { %v307_v31 = vpop.f32.mrf.mxu0  ;;  %v313_v32 = vpop.f32.mrf.mxu1 }
  0xe9   :  { %v254_v33 = vmax.f32 %v250_v29, 0.0  ;;  %v256_v34 = vmax.f32 %v252_v30, 0.0  ;;  %v308_v35 = vadd.f32 %v307_v31, %v306_v27  ;;  %v314_v36 = vadd.f32 %v313_v32, %v312_v28 }
  0xeb   :  { %258 = vst [vmem:[%s451_s3] sm:$0xff] %v254_v33  ;;  %260 = vst [vmem:[%s451_s3 + $0x10] sm:$0xff] %v256_v34  ;;  %v251_v37 = vadd.f32 %v308_v35, %v286_v23  ;;  %v253_v38 = vadd.f32 %v314_v36, %v286_v23 }
  0xed   :  { %v255_v39 = vmax.f32 %v251_v37, 0.0  ;;  %v257_v40 = vmax.f32 %v253_v38, 0.0 }
  0xef   :  { %259 = vst [vmem:[%s451_s3 + $0x8] sm:$0xff] %v255_v39  ;;  %261 = vst [vmem:[%s451_s3 + $0x18] sm:$0xff] %v257_v40 }

// kernel: _lambda_.18
= control target key start
LH: loop header
LB: loop body
LE: loop exit
PB: predicated region body
PF: predicated region fallthrough
CT: control target
= control target key end

     0   :  { %s637_s1 = inlined_call_operand.vmem [shape: bf16[384,128], index: 1, kind: input, shape index: {}]   ;;  %s638_s0 = inlined_call_operand.vmem [shape: bf16[32,384], index: 0, kind: input, shape index: {}]   ;;  %s639_s2 = inlined_call_operand.vmem [shape: f32[1,128], index: 2, kind: input, shape index: {}]   ;;  %s640_s3 = inlined_call_operand.vmem [shape: f32[32,128], index: 3, kind: output, shape index: {}]  }
   0x1   :  { %v480_v0 = vld [vmem:[%s637_s1 + $0x78] sm:$0xff]   ;;  %v483_v3 = vld [vmem:[%s637_s1 + $0x70] sm:$0xff]   ;;  %v486_v6 = vld [vmem:[%s637_s1 + $0x68] sm:$0xff]  }
   0x2   :  { %v481_v1 = vld [vmem:[%s637_s1 + $0x38] sm:$0xff]   ;;  %422 = vmatprep.subr.bf16.mxu0 %v480_v0  ;;  %v484_v4 = vld [vmem:[%s637_s1 + $0x30] sm:$0xff]   ;;  %v487_v7 = vld [vmem:[%s637_s1 + $0x28] sm:$0xff]  }
   0x3   :  { %v482_v2 = vld [vmem:[%s637_s1 + $0xb8] sm:$0xff]   ;;  %423 = vmatpush3.bf16.msra.mxu0 %v481_v1  ;;  %v485_v5 = vld [vmem:[%s637_s1 + $0xb0] sm:$0xff]   ;;  %v488_v8 = vld [vmem:[%s637_s1 + $0xa8] sm:$0xff]  }
   0x4   :  { %460 = vmatprep.subr.bf16.mxu1 %v482_v2  ;;  %424 = vmatprep.subr.bf16.mxu0 %v483_v3  ;;  %v489_v9 = vld [vmem:[%s637_s1 + $0x60] sm:$0xff]   ;;  %v492_v12 = vld [vmem:[%s637_s1 + $0x58] sm:$0xff]   ;;  %v495_v15 = vld [vmem:[%s637_s1 + $0x50] sm:$0xff]  }
   0x5   :  { %461 = vmatpush3.bf16.msra.mxu1 %v482_v2  ;;  %v490_v10 = vld [vmem:[%s637_s1 + $0x20] sm:$0xff]   ;;  %v494_v13 = vld [vmem:[%s637_s1 + $0x98] sm:$0xff]   ;;  %v497_v16 = vld [vmem:[%s637_s1 + $0x90] sm:$0xff]  }
   0x6   :  { %462 = vmatprep.subr.bf16.mxu1 %v485_v5  ;;  %v491_v11 = vld [vmem:[%s637_s1 + $0xa0] sm:$0xff]   ;;  %v493_v14 = vld [vmem:[%s637_s1 + $0x18] sm:$0xff]   ;;  %v496_v17 = vld [vmem:[%s637_s1 + $0x10] sm:$0xff]  }
   0x7   :  { %425 = vmatpush3.bf16.msra.mxu0 %v484_v4  ;;  %v498_v18 = vld [vmem:[%s637_s1 + $0x48] sm:$0xff]   ;;  %v501_v21 = vld [vmem:[%s637_s1 + $0x40] sm:$0xff]  }
   0x8   :  { %426 = vmatprep.subr.bf16.mxu0 %v486_v6  ;;  %v499_v19 = vld [vmem:[%s637_s1 + $0x8] sm:$0xff]   ;;  %v503_v22 = vld [vmem:[%s637_s1 + $0x80] sm:$0xff]  }
   0x9   :  { %463 = vmatpush3.bf16.msra.mxu1 %v485_v5  ;;  %v500_v20 = vld [vmem:[%s637_s1 + $0x88] sm:$0xff]   ;;  %v506_v23 = vld [vmem:[%s638_s0 + $0x4] ss:$12 sps:$4 sm:$0xff]   ;;  %v421_v36 = vld [vmem:[%s639_s2] ss:$0 sm:$0xff] }
   0xa   :  { %464 = vmatprep.subr.bf16.mxu1 %v488_v8  ;;  %v507_v24 = vld [vmem:[%s638_s0 + $0x8] ss:$12 sps:$4 sm:$0xff]   ;;  %v502_v25 = vld [vmem:[%s637_s1] sm:$0xff]   ;;  %291 = vmatprep.mubr.bf16.mxu0 %v506_v23 }
   0xb   :  { %427 = vmatpush3.bf16.msra.mxu0 %v487_v7  ;;  %476 = vmatprep.mubr.bf16.mxu1 %v507_v24  ;;  %v504_v26 = vld [vmem:[%s638_s0] ss:$12 sps:$4 sm:$0xff]   ;;  %v509_v27 = vld [vmem:[%s638_s0 + $0x1c] ss:$12 sps:$4 sm:$0xff]   ;;  %v511_v29 = vld [vmem:[%s638_s0 + $0x18] ss:$12 sps:$4 sm:$0xff]  }
   0xc   :  { %428 = vmatprep.subr.bf16.mxu0 %v489_v9  ;;  %v508_v28 = vld [vmem:[%s638_s0 + $0x20] ss:$12 sps:$4 sm:$0xff]  }
   0xd   :  { %465 = vmatpush3.bf16.msra.mxu1 %v488_v8 }
   0xe   :  { %466 = vmatprep.subr.bf16.mxu1 %v491_v11 }
   0xf   :  { %429 = vmatpush3.bf16.msra.mxu0 %v490_v10 }
  0x10   :  { %430 = vmatprep.subr.bf16.mxu0 %v492_v12 }
  0x11   :  { %467 = vmatpush3.bf16.msra.mxu1 %v491_v11 }
  0x12   :  { %468 = vmatprep.subr.bf16.mxu1 %v494_v13 }
  0x13   :  { %431 = vmatpush3.bf16.msra.mxu0 %v493_v14 }
  0x14   :  { %432 = vmatprep.subr.bf16.mxu0 %v495_v15 }
  0x15   :  { %469 = vmatpush3.bf16.msra.mxu1 %v494_v13 }
  0x16   :  { %470 = vmatprep.subr.bf16.mxu1 %v497_v16 }
  0x17   :  { %433 = vmatpush3.bf16.msra.mxu0 %v496_v17 }
  0x18   :  { %434 = vmatprep.subr.bf16.mxu0 %v498_v18 }
  0x19   :  { %471 = vmatpush3.bf16.msra.mxu1 %v497_v16 }
  0x1a   :  { %472 = vmatprep.subr.bf16.mxu1 %v500_v20 }
  0x1b   :  { %435 = vmatpush3.bf16.msra.mxu0 %v499_v19 }
  0x1c   :  { %436 = vmatprep.subr.bf16.mxu0 %v501_v21 }
  0x1d   :  { %473 = vmatpush3.bf16.msra.mxu1 %v500_v20 }
  0x1e   :  { %474 = vmatprep.subr.bf16.mxu1 %v503_v22 }
  0x1f   :  { %437 = vmatpush3.bf16.msra.mxu0 %v502_v25 }
  0x21   :  { %475 = vmatpush3.bf16.msra.mxu1 %v503_v22 }
  0x22   :  { %292 = vmatmul.mubr.bf16.vlgmr.msra.gmra.mxu0 %v504_v26 }
  0x23   :  { %299 = vmatprep.mubr.bf16.mxu0 %v509_v27 }
  0x24   :  { %477 = vmatmul.mubr.bf16.vlgmr.msra.gmra.mxu1 %v508_v28 }
  0x2a   :  { %300 = vmatmul.mubr.bf16.gmra.mxu0 %v511_v29 }
  0xe2   :  { %v438_v30 = vpop.f32.mrf.mxu0 }
  0xe4   :  { %v439_v31 = vpop.f32.mrf.mxu0  ;;  %v478_v32 = vpop.f32.mrf.mxu1 }
  0xe5   :  { %v440_v33 = vadd.f32 %v439_v31, %v438_v30 }
  0xe6   :  { %v441_v34 = vpop.f32.mrf.mxu0  ;;  %v342_v35 = vpop.f32.mrf.mxu1 }
  0xe7   :  { %v343_v37 = vadd.f32 %v440_v33, %v342_v35 }
  0xe8   :  { %v442_v38 = vpop.f32.mrf.mxu0  ;;  %v479_v39 = vpop.f32.mrf.mxu1 }
  0xe9   :  { %v379_v40 = vadd.f32 %v421_v36, %v343_v37  ;;  %v443_v41 = vadd.f32 %v442_v38, %v441_v34 }
  0xea   :  { %v444_v42 = vpop.f32.mrf.mxu0  ;;  %v345_v43 = vpop.f32.mrf.mxu1 }
  0xeb   :  { %383 = vst [vmem:[%s640_s3] sm:$0xff] %v379_v40  ;;  %v346_v44 = vadd.f32 %v443_v41, %v345_v43 }
  0xec   :  { %v445_v45 = vpop.f32.mrf.mxu0 }
  0xed   :  { %v380_v46 = vadd.f32 %v421_v36, %v346_v44  ;;  %v446_v47 = vadd.f32 %v445_v45, %v444_v42 }
  0xee   :  { %v447_v48 = vpop.f32.mrf.mxu0 }
  0xef   :  { %384 = vst [vmem:[%s640_s3 + $0x8] sm:$0xff] %v380_v46  ;;  %v351_v49 = vadd.f32 %v478_v32, %v446_v47 }
  0xf0   :  { %v448_v50 = vpop.f32.mrf.mxu0 }
  0xf1   :  { %v381_v51 = vadd.f32 %v421_v36, %v351_v49  ;;  %v449_v52 = vadd.f32 %v448_v50, %v447_v48 }
  0xf3   :  { %385 = vst [vmem:[%s640_s3 + $0x10] sm:$0xff] %v381_v51  ;;  %v354_v53 = vadd.f32 %v479_v39, %v449_v52 }
  0xf5   :  { %v382_v54 = vadd.f32 %v421_v36, %v354_v53 }
  0xf7   :  { %386 = vst [vmem:[%s640_s3 + $0x18] sm:$0xff] %v382_v54 }

// kernel: _lambda_.19
= control target key start
LH: loop header
LB: loop body
LE: loop exit
PB: predicated region body
PF: predicated region fallthrough
CT: control target
= control target key end

     0   :  { %v517_v25 = vmov 0   ;;  %s649_s1 = inlined_call_operand.vmem [shape: bf16[384,128], index: 1, kind: input, shape index: {}]   ;;  %s650_s0 = inlined_call_operand.vmem [shape: bf16[32,384], index: 0, kind: input, shape index: {}]   ;;  %s651_s2 = inlined_call_operand.vmem [shape: f32[1,128], index: 2, kind: input, shape index: {}]   ;;  %s652_s3 = inlined_call_operand.vmem [shape: f32[32,128], index: 3, kind: output, shape index: {}]  }
   0x1   :  { %v493_v0 = vld [vmem:[%s649_s1 + $0x78] sm:$0xff]   ;;  %v496_v3 = vld [vmem:[%s649_s1 + $0x70] sm:$0xff]   ;;  %v499_v6 = vld [vmem:[%s649_s1 + $0x68] sm:$0xff]  }
   0x2   :  { %v494_v1 = vld [vmem:[%s649_s1 + $0x38] sm:$0xff]   ;;  %434 = vmatprep.subr.bf16.mxu0 %v493_v0  ;;  %v497_v4 = vld [vmem:[%s649_s1 + $0x30] sm:$0xff]   ;;  %v500_v7 = vld [vmem:[%s649_s1 + $0x28] sm:$0xff]  }
   0x3   :  { %v495_v2 = vld [vmem:[%s649_s1 + $0xb8] sm:$0xff]   ;;  %435 = vmatpush3.bf16.msra.mxu0 %v494_v1  ;;  %v498_v5 = vld [vmem:[%s649_s1 + $0xb0] sm:$0xff]   ;;  %v501_v8 = vld [vmem:[%s649_s1 + $0xa8] sm:$0xff]  }
   0x4   :  { %472 = vmatprep.subr.bf16.mxu1 %v495_v2  ;;  %436 = vmatprep.subr.bf16.mxu0 %v496_v3  ;;  %v502_v9 = vld [vmem:[%s649_s1 + $0x60] sm:$0xff]   ;;  %v505_v12 = vld [vmem:[%s649_s1 + $0x58] sm:$0xff]   ;;  %v508_v15 = vld [vmem:[%s649_s1 + $0x50] sm:$0xff]  }
   0x5   :  { %473 = vmatpush3.bf16.msra.mxu1 %v495_v2  ;;  %v503_v10 = vld [vmem:[%s649_s1 + $0x20] sm:$0xff]   ;;  %v507_v13 = vld [vmem:[%s649_s1 + $0x98] sm:$0xff]   ;;  %v510_v16 = vld [vmem:[%s649_s1 + $0x90] sm:$0xff]  }
   0x6   :  { %474 = vmatprep.subr.bf16.mxu1 %v498_v5  ;;  %v504_v11 = vld [vmem:[%s649_s1 + $0xa0] sm:$0xff]   ;;  %v506_v14 = vld [vmem:[%s649_s1 + $0x18] sm:$0xff]   ;;  %v509_v17 = vld [vmem:[%s649_s1 + $0x10] sm:$0xff]  }
   0x7   :  { %437 = vmatpush3.bf16.msra.mxu0 %v497_v4  ;;  %v511_v18 = vld [vmem:[%s649_s1 + $0x48] sm:$0xff]   ;;  %v514_v21 = vld [vmem:[%s649_s1 + $0x40] sm:$0xff]   ;;  %v26_v28 = vld [vmem:[%s650_s0 + $0x14] sm:$0xf] }
   0x8   :  { %438 = vmatprep.subr.bf16.mxu0 %v499_v6  ;;  %v512_v19 = vld [vmem:[%s649_s1 + $0x8] sm:$0xff]   ;;  %v23_v22 = vld [vmem:[%s650_s0] sm:$0xff]  ;;  %v34_v33 = vmax.bf16 %v517_v25, %v26_v28  ;;  %v27_v34 = vld [vmem:[%s650_s0 + $0x18] sm:$0xff] }
   0x9   :  { %475 = vmatpush3.bf16.msra.mxu1 %v498_v5  ;;  %v513_v20 = vld [vmem:[%s649_s1 + $0x88] sm:$0xff]   ;;  %v31_v26 = vmax.bf16 %v517_v25, %v23_v22  ;;  %v28_v30 = vld [vmem:[%s650_s0 + $0x20] sm:$0xf]  ;;  %v35_v38 = vmax.bf16 %v517_v25, %v27_v34 }
   0xa   :  { %476 = vmatprep.subr.bf16.mxu1 %v501_v8  ;;  %v25_v23 = vld [vmem:[%s650_s0 + $0xc] sm:$0xff]  ;;  %v24_v24 = vld [vmem:[%s650_s0 + $0x8] sm:$0xf]  ;;  %v516_v32 = vld [vmem:[%s649_s1 + $0x80] sm:$0xff]   ;;  %v36_v41 = vmax.bf16 %v517_v25, %v28_v30 }
   0xb   :  { %439 = vmatpush3.bf16.msra.mxu0 %v500_v7  ;;  %v33_v27 = vmax.bf16 %v517_v25, %v25_v23  ;;  %v32_v29 = vmax.bf16 %v517_v25, %v24_v24  ;;  %v30_v31 = vld [vmem:[%s650_s0 + $0x2c] sm:$0xf]  ;;  %v29_v35 = vld [vmem:[%s650_s0 + $0x24] sm:$0xff]  ;;  %v433_v53 = vld [vmem:[%s651_s2] ss:$0 sm:$0xff] }
   0xc   :  { %440 = vmatprep.subr.bf16.mxu0 %v502_v9  ;;  %v515_v36 = vld [vmem:[%s649_s1] sm:$0xff]   ;;  %v37_v39 = vmax.bf16 %v517_v25, %v29_v35  ;;  %v38_v42 = vmax.bf16 %v517_v25, %v30_v31 }
   0xd   :  { %477 = vmatpush3.bf16.msra.mxu1 %v501_v8  ;;  %v404_v37 = vcombine.high %v31_v26, %v33_v27  ;;  %v405_v40 = vcombine.low %v32_v29, %v34_v33  ;;  %v403_v43 = vcombine.low %v31_v26, %v33_v27 }
   0xe   :  { %478 = vmatprep.subr.bf16.mxu1 %v504_v11  ;;  %v407_v44 = vcombine.high %v35_v38, %v37_v39  ;;  %v408_v45 = vcombine.low %v36_v41, %v38_v42  ;;  %v406_v46 = vcombine.low %v35_v38, %v37_v39 }
   0xf   :  { %441 = vmatpush3.bf16.msra.mxu0 %v503_v10  ;;  %299 = vmatprep.mubr.bf16.mxu0 %v404_v37 }
  0x10   :  { %442 = vmatprep.subr.bf16.mxu0 %v505_v12  ;;  %488 = vmatprep.mubr.bf16.mxu1 %v405_v40 }
  0x11   :  { %479 = vmatpush3.bf16.msra.mxu1 %v504_v11 }
  0x12   :  { %480 = vmatprep.subr.bf16.mxu1 %v507_v13 }
  0x13   :  { %443 = vmatpush3.bf16.msra.mxu0 %v506_v14 }
  0x14   :  { %444 = vmatprep.subr.bf16.mxu0 %v508_v15 }
  0x15   :  { %481 = vmatpush3.bf16.msra.mxu1 %v507_v13 }
  0x16   :  { %482 = vmatprep.subr.bf16.mxu1 %v510_v16 }
  0x17   :  { %445 = vmatpush3.bf16.msra.mxu0 %v509_v17 }
  0x18   :  { %446 = vmatprep.subr.bf16.mxu0 %v511_v18 }
  0x19   :  { %483 = vmatpush3.bf16.msra.mxu1 %v510_v16 }
  0x1a   :  { %484 = vmatprep.subr.bf16.mxu1 %v513_v20 }
  0x1b   :  { %447 = vmatpush3.bf16.msra.mxu0 %v512_v19 }
  0x1c   :  { %448 = vmatprep.subr.bf16.mxu0 %v514_v21 }
  0x1d   :  { %485 = vmatpush3.bf16.msra.mxu1 %v513_v20 }
  0x1e   :  { %486 = vmatprep.subr.bf16.mxu1 %v516_v32 }
  0x1f   :  { %449 = vmatpush3.bf16.msra.mxu0 %v515_v36 }
  0x21   :  { %487 = vmatpush3.bf16.msra.mxu1 %v516_v32 }
  0x22   :  { %300 = vmatmul.mubr.bf16.vlgmr.msra.gmra.mxu0 %v403_v43 }
  0x23   :  { %307 = vmatprep.mubr.bf16.mxu0 %v407_v44 }
  0x24   :  { %489 = vmatmul.mubr.bf16.vlgmr.msra.gmra.mxu1 %v408_v45 }
  0x2a   :  { %308 = vmatmul.mubr.bf16.gmra.mxu0 %v406_v46 }
  0xe2   :  { %v450_v47 = vpop.f32.mrf.mxu0 }
  0xe4   :  { %v451_v48 = vpop.f32.mrf.mxu0  ;;  %v490_v49 = vpop.f32.mrf.mxu1 }
  0xe5   :  { %v452_v50 = vadd.f32 %v451_v48, %v450_v47 }
  0xe6   :  { %v453_v51 = vpop.f32.mrf.mxu0  ;;  %v350_v52 = vpop.f32.mrf.mxu1 }
  0xe7   :  { %v351_v54 = vadd.f32 %v452_v50, %v350_v52 }
  0xe8   :  { %v454_v55 = vpop.f32.mrf.mxu0  ;;  %v491_v56 = vpop.f32.mrf.mxu1 }
  0xe9   :  { %v387_v57 = vadd.f32 %v433_v53, %v351_v54  ;;  %v455_v58 = vadd.f32 %v454_v55, %v453_v51 }
  0xea   :  { %v456_v59 = vpop.f32.mrf.mxu0  ;;  %v353_v60 = vpop.f32.mrf.mxu1 }
  0xeb   :  { %v391_v61 = vmax.f32 %v387_v57, 0.0  ;;  %v354_v62 = vadd.f32 %v455_v58, %v353_v60 }
  0xec   :  { %v457_v63 = vpop.f32.mrf.mxu0 }
  0xed   :  { %395 = vst [vmem:[%s652_s3] sm:$0xff] %v391_v61  ;;  %v388_v0 = vadd.f32 %v433_v53, %v354_v62  ;;  %v458_v1 = vadd.f32 %v457_v63, %v456_v59 }
  0xee   :  { %v459_v2 = vpop.f32.mrf.mxu0 }
  0xef   :  { %v392_v3 = vmax.f32 %v388_v0, 0.0  ;;  %v359_v4 = vadd.f32 %v490_v49, %v458_v1 }
  0xf0   :  { %v460_v5 = vpop.f32.mrf.mxu0 }
  0xf1   :  { %396 = vst [vmem:[%s652_s3 + $0x8] sm:$0xff] %v392_v3  ;;  %v389_v6 = vadd.f32 %v433_v53, %v359_v4  ;;  %v461_v7 = vadd.f32 %v460_v5, %v459_v2 }
  0xf3   :  { %v393_v8 = vmax.f32 %v389_v6, 0.0  ;;  %v362_v9 = vadd.f32 %v491_v56, %v461_v7 }
  0xf5   :  { %397 = vst [vmem:[%s652_s3 + $0x10] sm:$0xff] %v393_v8  ;;  %v390_v10 = vadd.f32 %v433_v53, %v362_v9 }
  0xf7   :  { %v394_v11 = vmax.f32 %v390_v10, 0.0 }
  0xf9   :  { %398 = vst [vmem:[%s652_s3 + $0x18] sm:$0xff] %v394_v11 }

// kernel: _lambda_.20
= control target key start
LH: loop header
LB: loop body
LE: loop exit
PB: predicated region body
PF: predicated region fallthrough
CT: control target
= control target key end

     0   :  { %s334_s1 = inlined_call_operand.vmem [shape: bf16[128,128], index: 1, kind: input, shape index: {}]   ;;  %s335_s0 = inlined_call_operand.vmem [shape: bf16[32,128], index: 0, kind: input, shape index: {}]   ;;  %s336_s2 = inlined_call_operand.vmem [shape: f32[1,128], index: 2, kind: input, shape index: {}]   ;;  %s337_s3 = inlined_call_operand.vmem [shape: f32[32,128], index: 3, kind: input, shape index: {}]   ;;  %s338_s4 = inlined_call_operand.vmem [shape: f32[32,128], index: 4, kind: output, shape index: {}]  }
   0x1   :  { %v242_v0 = vld [vmem:[%s334_s1 + $0x38] sm:$0xff]   ;;  %v243_v1 = vld [vmem:[%s334_s1 + $0x30] sm:$0xff]   ;;  %v244_v2 = vld [vmem:[%s334_s1 + $0x28] sm:$0xff]  }
   0x2   :  { %222 = vmatprep.subr.bf16.mxu0 %v242_v0  ;;  %v245_v3 = vld [vmem:[%s334_s1 + $0x20] sm:$0xff]   ;;  %v246_v5 = vld [vmem:[%s334_s1 + $0x18] sm:$0xff]   ;;  %v247_v6 = vld [vmem:[%s334_s1 + $0x10] sm:$0xff]  }
   0x3   :  { %223 = vmatpush3.bf16.msra.mxu0 %v242_v0  ;;  %v250_v4 = vld [vmem:[%s335_s0] sm:$0xff]   ;;  %v248_v7 = vld [vmem:[%s334_s1 + $0x8] sm:$0xff]   ;;  %v187_v12 = vld [vmem:[%s337_s3 + $0x10] sm:$0xff] }
   0x4   :  { %224 = vmatprep.subr.bf16.mxu0 %v243_v1  ;;  %238 = vmatprep.mubr.bf16.mxu0 %v250_v4  ;;  %v249_v8 = vld [vmem:[%s334_s1] sm:$0xff]   ;;  %v251_v9 = vld [vmem:[%s335_s0 + $0x8] sm:$0xff]   ;;  %v188_v19 = vld [vmem:[%s337_s3 + $0x18] sm:$0xff] }
   0x5   :  { %v211_v10 = vld [vmem:[%s336_s2] ss:$0 sm:$0xff]  ;;  %v186_v23 = vld [vmem:[%s337_s3 + $0x8] sm:$0xff] }
   0x6   :  { %v185_v15 = vld [vmem:[%s337_s3] sm:$0xff] }
   0x7   :  { %225 = vmatpush3.bf16.msra.mxu0 %v243_v1 }
   0x8   :  { %226 = vmatprep.subr.bf16.mxu0 %v244_v2 }
   0xb   :  { %227 = vmatpush3.bf16.msra.mxu0 %v244_v2 }
   0xc   :  { %228 = vmatprep.subr.bf16.mxu0 %v245_v3 }
   0xf   :  { %229 = vmatpush3.bf16.msra.mxu0 %v245_v3 }
  0x10   :  { %230 = vmatprep.subr.bf16.mxu0 %v246_v5 }
  0x13   :  { %231 = vmatpush3.bf16.msra.mxu0 %v246_v5 }
  0x14   :  { %232 = vmatprep.subr.bf16.mxu0 %v247_v6 }
  0x17   :  { %233 = vmatpush3.bf16.msra.mxu0 %v247_v6 }
  0x18   :  { %234 = vmatprep.subr.bf16.mxu0 %v248_v7 }
  0x1b   :  { %235 = vmatpush3.bf16.msra.mxu0 %v248_v7 }
  0x1c   :  { %236 = vmatprep.subr.bf16.mxu0 %v249_v8 }
  0x1f   :  { %237 = vmatpush3.bf16.msra.mxu0 %v249_v8 }
  0x22   :  { %239 = vmatmul.mubr.bf16.vlgmr.msra.gmra.mxu0 %v251_v9 }
  0xe2   :  { %v240_v11 = vpop.f32.mrf.mxu0 }
  0xe3   :  { %v183_v13 = vadd.f32 %v240_v11, %v211_v10 }
  0xe4   :  { %v144_v14 = vpop.f32.mrf.mxu0 }
  0xe5   :  { %v191_v16 = vadd.f32 %v187_v12, %v183_v13  ;;  %v181_v17 = vadd.f32 %v211_v10, %v144_v14 }
  0xe6   :  { %v241_v18 = vpop.f32.mrf.mxu0 }
  0xe7   :  { %195 = vst [vmem:[%s338_s4 + $0x10] sm:$0xff] %v191_v16  ;;  %v189_v20 = vadd.f32 %v185_v15, %v181_v17  ;;  %v184_v21 = vadd.f32 %v241_v18, %v211_v10 }
  0xe8   :  { %v147_v22 = vpop.f32.mrf.mxu0 }
  0xe9   :  { %193 = vst [vmem:[%s338_s4] sm:$0xff] %v189_v20  ;;  %v192_v24 = vadd.f32 %v188_v19, %v184_v21  ;;  %v182_v25 = vadd.f32 %v211_v10, %v147_v22 }
  0xeb   :  { %196 = vst [vmem:[%s338_s4 + $0x18] sm:$0xff] %v192_v24  ;;  %v190_v26 = vadd.f32 %v186_v23, %v182_v25 }
  0xed   :  { %194 = vst [vmem:[%s338_s4 + $0x8] sm:$0xff] %v190_v26 }

// kernel: _lambda_.22
= control target key start
LH: loop header
LB: loop body
LE: loop exit
PB: predicated region body
PF: predicated region fallthrough
CT: control target
= control target key end

     0   :  { %s338_s1 = inlined_call_operand.vmem [shape: bf16[128,128], index: 1, kind: input, shape index: {}]   ;;  %s339_s0 = inlined_call_operand.vmem [shape: bf16[32,128], index: 0, kind: input, shape index: {}]   ;;  %s340_s2 = inlined_call_operand.vmem [shape: f32[1,128], index: 2, kind: input, shape index: {}]   ;;  %s341_s3 = inlined_call_operand.vmem [shape: f32[32,128], index: 3, kind: input, shape index: {}]   ;;  %s342_s4 = inlined_call_operand.vmem [shape: f32[32,128], index: 4, kind: output, shape index: {}]  }
   0x1   :  { %v246_v0 = vld [vmem:[%s338_s1 + $0x38] sm:$0xff]   ;;  %v247_v1 = vld [vmem:[%s338_s1 + $0x30] sm:$0xff]   ;;  %v248_v2 = vld [vmem:[%s338_s1 + $0x28] sm:$0xff]  }
   0x2   :  { %226 = vmatprep.subr.bf16.mxu0 %v246_v0  ;;  %v249_v3 = vld [vmem:[%s338_s1 + $0x20] sm:$0xff]   ;;  %v250_v5 = vld [vmem:[%s338_s1 + $0x18] sm:$0xff]   ;;  %v251_v6 = vld [vmem:[%s338_s1 + $0x10] sm:$0xff]  }
   0x3   :  { %227 = vmatpush3.bf16.msra.mxu0 %v246_v0  ;;  %v254_v4 = vld [vmem:[%s339_s0] sm:$0xff]   ;;  %v252_v7 = vld [vmem:[%s338_s1 + $0x8] sm:$0xff]   ;;  %v187_v12 = vld [vmem:[%s341_s3 + $0x10] sm:$0xff] }
   0x4   :  { %228 = vmatprep.subr.bf16.mxu0 %v247_v1  ;;  %242 = vmatprep.mubr.bf16.mxu0 %v254_v4  ;;  %v253_v8 = vld [vmem:[%s338_s1] sm:$0xff]   ;;  %v255_v9 = vld [vmem:[%s339_s0 + $0x8] sm:$0xff]   ;;  %v188_v19 = vld [vmem:[%s341_s3 + $0x18] sm:$0xff] }
   0x5   :  { %v215_v10 = vld [vmem:[%s340_s2] ss:$0 sm:$0xff]  ;;  %v186_v24 = vld [vmem:[%s341_s3 + $0x8] sm:$0xff] }
   0x6   :  { %v185_v15 = vld [vmem:[%s341_s3] sm:$0xff] }
   0x7   :  { %229 = vmatpush3.bf16.msra.mxu0 %v247_v1 }
   0x8   :  { %230 = vmatprep.subr.bf16.mxu0 %v248_v2 }
   0xb   :  { %231 = vmatpush3.bf16.msra.mxu0 %v248_v2 }
   0xc   :  { %232 = vmatprep.subr.bf16.mxu0 %v249_v3 }
   0xf   :  { %233 = vmatpush3.bf16.msra.mxu0 %v249_v3 }
  0x10   :  { %234 = vmatprep.subr.bf16.mxu0 %v250_v5 }
  0x13   :  { %235 = vmatpush3.bf16.msra.mxu0 %v250_v5 }
  0x14   :  { %236 = vmatprep.subr.bf16.mxu0 %v251_v6 }
  0x17   :  { %237 = vmatpush3.bf16.msra.mxu0 %v251_v6 }
  0x18   :  { %238 = vmatprep.subr.bf16.mxu0 %v252_v7 }
  0x1b   :  { %239 = vmatpush3.bf16.msra.mxu0 %v252_v7 }
  0x1c   :  { %240 = vmatprep.subr.bf16.mxu0 %v253_v8 }
  0x1f   :  { %241 = vmatpush3.bf16.msra.mxu0 %v253_v8 }
  0x22   :  { %243 = vmatmul.mubr.bf16.vlgmr.msra.gmra.mxu0 %v255_v9 }
  0xe2   :  { %v244_v11 = vpop.f32.mrf.mxu0 }
  0xe3   :  { %v183_v13 = vadd.f32 %v244_v11, %v215_v10 }
  0xe4   :  { %v144_v14 = vpop.f32.mrf.mxu0 }
  0xe5   :  { %v191_v16 = vadd.f32 %v187_v12, %v183_v13  ;;  %v181_v17 = vadd.f32 %v215_v10, %v144_v14 }
  0xe6   :  { %v245_v18 = vpop.f32.mrf.mxu0 }
  0xe7   :  { %v195_v20 = vmax.f32 %v191_v16, 0.0  ;;  %v189_v21 = vadd.f32 %v185_v15, %v181_v17  ;;  %v184_v22 = vadd.f32 %v245_v18, %v215_v10 }
  0xe8   :  { %v147_v23 = vpop.f32.mrf.mxu0 }
  0xe9   :  { %199 = vst [vmem:[%s342_s4 + $0x10] sm:$0xff] %v195_v20  ;;  %v193_v25 = vmax.f32 %v189_v21, 0.0  ;;  %v192_v26 = vadd.f32 %v188_v19, %v184_v22  ;;  %v182_v27 = vadd.f32 %v215_v10, %v147_v23 }
  0xeb   :  { %197 = vst [vmem:[%s342_s4] sm:$0xff] %v193_v25  ;;  %v196_v28 = vmax.f32 %v192_v26, 0.0  ;;  %v190_v29 = vadd.f32 %v186_v24, %v182_v27 }
  0xed   :  { %200 = vst [vmem:[%s342_s4 + $0x18] sm:$0xff] %v196_v28  ;;  %v194_v30 = vmax.f32 %v190_v29, 0.0 }
  0xef   :  { %198 = vst [vmem:[%s342_s4 + $0x8] sm:$0xff] %v194_v30 }

// kernel: _lambda_.23
= control target key start
LH: loop header
LB: loop body
LE: loop exit
PB: predicated region body
PF: predicated region fallthrough
CT: control target
= control target key end

     0   :  { %s306_s1 = inlined_call_operand.vmem [shape: bf16[128,128], index: 1, kind: input, shape index: {}]   ;;  %s307_s0 = inlined_call_operand.vmem [shape: bf16[32,128], index: 0, kind: input, shape index: {}]   ;;  %s308_s2 = inlined_call_operand.vmem [shape: f32[1,128], index: 2, kind: input, shape index: {}]   ;;  %s309_s3 = inlined_call_operand.vmem [shape: f32[32,128], index: 3, kind: output, shape index: {}]  }
   0x1   :  { %v231_v0 = vld [vmem:[%s306_s1 + $0x38] sm:$0xff]   ;;  %v232_v1 = vld [vmem:[%s306_s1 + $0x30] sm:$0xff]   ;;  %v233_v2 = vld [vmem:[%s306_s1 + $0x28] sm:$0xff]  }
   0x2   :  { %211 = vmatprep.subr.bf16.mxu0 %v231_v0  ;;  %v234_v3 = vld [vmem:[%s306_s1 + $0x20] sm:$0xff]   ;;  %v235_v5 = vld [vmem:[%s306_s1 + $0x18] sm:$0xff]   ;;  %v236_v6 = vld [vmem:[%s306_s1 + $0x10] sm:$0xff]  }
   0x3   :  { %212 = vmatpush3.bf16.msra.mxu0 %v231_v0  ;;  %v239_v4 = vld [vmem:[%s307_s0] sm:$0xff]   ;;  %v237_v7 = vld [vmem:[%s306_s1 + $0x8] sm:$0xff]  }
   0x4   :  { %213 = vmatprep.subr.bf16.mxu0 %v232_v1  ;;  %227 = vmatprep.mubr.bf16.mxu0 %v239_v4  ;;  %v238_v8 = vld [vmem:[%s306_s1] sm:$0xff]   ;;  %v240_v9 = vld [vmem:[%s307_s0 + $0x8] sm:$0xff]  }
   0x5   :  { %v200_v10 = vld [vmem:[%s308_s2] ss:$0 sm:$0xff] }
   0x7   :  { %214 = vmatpush3.bf16.msra.mxu0 %v232_v1 }
   0x8   :  { %215 = vmatprep.subr.bf16.mxu0 %v233_v2 }
   0xb   :  { %216 = vmatpush3.bf16.msra.mxu0 %v233_v2 }
   0xc   :  { %217 = vmatprep.subr.bf16.mxu0 %v234_v3 }
   0xf   :  { %218 = vmatpush3.bf16.msra.mxu0 %v234_v3 }
  0x10   :  { %219 = vmatprep.subr.bf16.mxu0 %v235_v5 }
  0x13   :  { %220 = vmatpush3.bf16.msra.mxu0 %v235_v5 }
  0x14   :  { %221 = vmatprep.subr.bf16.mxu0 %v236_v6 }
  0x17   :  { %222 = vmatpush3.bf16.msra.mxu0 %v236_v6 }
  0x18   :  { %223 = vmatprep.subr.bf16.mxu0 %v237_v7 }
  0x1b   :  { %224 = vmatpush3.bf16.msra.mxu0 %v237_v7 }
  0x1c   :  { %225 = vmatprep.subr.bf16.mxu0 %v238_v8 }
  0x1f   :  { %226 = vmatpush3.bf16.msra.mxu0 %v238_v8 }
  0x22   :  { %228 = vmatmul.mubr.bf16.vlgmr.msra.gmra.mxu0 %v240_v9 }
  0xe2   :  { %v229_v11 = vpop.f32.mrf.mxu0 }
  0xe3   :  { %v180_v12 = vadd.f32 %v229_v11, %v200_v10 }
  0xe4   :  { %v141_v13 = vpop.f32.mrf.mxu0 }
  0xe5   :  { %184 = vst [vmem:[%s309_s3 + $0x10] sm:$0xff] %v180_v12  ;;  %v178_v14 = vadd.f32 %v200_v10, %v141_v13 }
  0xe6   :  { %v230_v15 = vpop.f32.mrf.mxu0 }
  0xe7   :  { %182 = vst [vmem:[%s309_s3] sm:$0xff] %v178_v14  ;;  %v181_v16 = vadd.f32 %v230_v15, %v200_v10 }
  0xe8   :  { %v144_v17 = vpop.f32.mrf.mxu0 }
  0xe9   :  { %185 = vst [vmem:[%s309_s3 + $0x18] sm:$0xff] %v181_v16  ;;  %v179_v18 = vadd.f32 %v200_v10, %v144_v17 }
  0xeb   :  { %183 = vst [vmem:[%s309_s3 + $0x8] sm:$0xff] %v179_v18 }

// kernel: _lambda_.24
= control target key start
LH: loop header
LB: loop body
LE: loop exit
PB: predicated region body
PF: predicated region fallthrough
CT: control target
= control target key end

     0   :  { %11 = vsyncpa [#allocation5], 0  ;;  %s766_s0 = inlined_call_operand.vmem [shape: f32[32,128], index: 0, kind: input, shape index: {}]   ;;  %s767_s1 = inlined_call_operand.vmem [shape: f32[128,128], index: 1, kind: input, shape index: {}]   ;;  %s768_s2 = inlined_call_operand.vmem [shape: f32[1,128], index: 2, kind: input, shape index: {}]   ;;  %s769_s3 = inlined_call_operand.vmem [shape: f32[32,128], index: 3, kind: output, shape index: {0}]   ;;  %s770_s4 = inlined_call_operand.hbm [shape: f32[1,1], index: 4, kind: output, shape index: {1}]   ;;  %s771_s5 = inlined_call_operand.hbm [shape: f32[1,1], index: 5, kind: output, shape index: {2}]  }
   0x1   :  { %v45_v0 = vld [vmem:[%s767_s1 + $0x78] sm:$0xff]  ;;  %v44_v1 = vld [vmem:[%s767_s1 + $0x70] sm:$0xff]  ;;  %v43_v2 = vld [vmem:[%s767_s1 + $0x68] sm:$0xff] }
   0x2   :  { %491 = vmatprep.subr.mxu0 %v45_v0  ;;  %529 = vmatprep.subr.mxu1 %v45_v0  ;;  %v667_v3 = vld [vmem:[%s766_s0] sm:$0xff] }
   0x3   :  { %492 = vmatpush3.xpose.msra.mxu0 %v45_v0  ;;  %530 = vmatpush3.msra.mxu1 %v45_v0 }
   0x4   :  { %493 = vmatprep.subr.mxu0 %v44_v1  ;;  %531 = vmatprep.subr.mxu1 %v44_v1 }
   0x5   :  { %532 = vmatpush3.msra.mxu1 %v44_v1  ;;  %523 = vmatprep.mubr.f32.mxu0 %v667_v3 }
   0x6   :  { %533 = vmatprep.subr.mxu1 %v43_v2 }
   0x7   :  { %494 = vmatpush3.xpose.msra.mxu0 %v44_v1 }
   0x8   :  { %12 = vsyncpa [#allocation7], 0  ;;  %495 = vmatprep.subr.mxu0 %v43_v2  ;;  %v42_v4 = vld [vmem:[%s767_s1 + $0x60] sm:$0xff]  ;;  %534 = vmatpush3.msra.mxu1 %v43_v2  ;;  %v41_v5 = vld [vmem:[%s767_s1 + $0x58] sm:$0xff]  ;;  %v146_v33 = vlaneseq  ;;  %vm402_vm12 = vcmask 1040384   ;;  %vm23_vm13 = vcmask 0  }
   0x9   :  { %535 = vmatprep.subr.mxu1 %v42_v4  ;;  %v40_v6 = vld [vmem:[%s767_s1 + $0x50] sm:$0xff]  ;;  %v39_v7 = vld [vmem:[%s767_s1 + $0x48] sm:$0xff]  ;;  %v38_v8 = vld [vmem:[%s767_s1 + $0x40] sm:$0xff]  ;;  %s623_s15 = smov [#allocation6]  }
   0xa   :  { %536 = vmatpush3.msra.mxu1 %v42_v4  ;;  %v37_v9 = vld [vmem:[%s767_s1 + $0x38] sm:$0xff]  ;;  %v36_v10 = vld [vmem:[%s767_s1 + $0x30] sm:$0xff]  ;;  %v35_v11 = vld [vmem:[%s767_s1 + $0x28] sm:$0xff]  ;;  %v730_v34 = vand.u32 127, %v146_v33  ;;  %s428_s16 = sshll.u32 %s623_s15, 4  ;;  %s429_s16 = int_to_ptr.vmem [resolvable:$true] %s428_s16 }
   0xb   :  { %496 = vmatpush3.xpose.msra.mxu0 %v43_v2  ;;  %537 = vmatprep.subr.mxu1 %v41_v5  ;;  %v34_v12 = vld [vmem:[%s767_s1 + $0x20] sm:$0xff]  ;;  %v33_v13 = vld [vmem:[%s767_s1 + $0x18] sm:$0xff]  ;;  %v32_v14 = vld [vmem:[%s767_s1 + $0x10] sm:$0xff]  ;;  %s577_s17 = scalar_lea.vmem %s429_s16, 16  ;;  %s581_s18 = scalar_lea.vmem %s429_s16, 32 }
   0xc   :  { %497 = vmatprep.subr.mxu0 %v42_v4  ;;  %538 = vmatpush3.msra.mxu1 %v41_v5  ;;  %v31_v15 = vld [vmem:[%s767_s1 + $0x8] sm:$0xff]  ;;  %v30_v16 = vld [vmem:[%s767_s1] sm:$0xff]  ;;  %v717_v18 = vld [vmem:[%s766_s0 + $0x10] sm:$0xff]  ;;  %p578_p0 = scmp.ne.s32.totalorder %s429_s16, %s577_s17  ;;  %p582_p1 = scmp.lt.s32.totalorder %s429_s16, %s429_s16 }
   0xd   :  { %539 = vmatprep.subr.mxu1 %v40_v6  ;;  %v712_v17 = vld [vmem:[%s766_s0 + $0x8] sm:$0xff]  ;;  %v724_v19 = vld [vmem:[%s766_s0 + $0x18] sm:$0xff]  ;;  %v442_v24 = vld [vmem:[%s768_s2] ss:$0 sm:$0xff]  ;;  %p583_p2 = scmp.lt.s32.totalorder %s581_s18, %s577_s17 }
   0xe   :  { %540 = vmatpush3.msra.mxu1 %v40_v6 }
   0xf   :  { %498 = vmatpush3.xpose.msra.mxu0 %v42_v4  ;;  %541 = vmatprep.subr.mxu1 %v39_v7  ;;  %v621_v4 = vmov 0.0   ;;  %p584_p3 = por %p583_p2, %p582_p1 }
  0x10   :  { %499 = vmatprep.subr.mxu0 %v41_v5  ;;  %542 = vmatpush3.msra.mxu1 %v39_v7  ;;  %25 = vst [vmem:[#allocation3] sm:$0x1] %v621_v4  ;;  %24 = vst.msk [vmem:[#allocation2] sm:$0x1] %vm23_vm13, %v621_v4 }
  0x11   :  { %543 = vmatprep.subr.mxu1 %v38_v8  ;;  %p585_p4 = pnand %p584_p3, %p578_p0 }
  0x12   :  { %544 = vmatpush3.msra.mxu1 %v38_v8 }
  0x13   :  { %500 = vmatpush3.xpose.msra.mxu0 %v41_v5  ;;  %545 = vmatprep.subr.mxu1 %v37_v9 }
  0x14   :  { %501 = vmatprep.subr.mxu0 %v40_v6  ;;  %546 = vmatpush3.msra.mxu1 %v37_v9 }
  0x15   :  { %547 = vmatprep.subr.mxu1 %v36_v10 }
  0x16   :  { %548 = vmatpush3.msra.mxu1 %v36_v10 }
  0x17   :  { %502 = vmatpush3.xpose.msra.mxu0 %v40_v6  ;;  %549 = vmatprep.subr.mxu1 %v35_v11 }
  0x18   :  { %503 = vmatprep.subr.mxu0 %v39_v7  ;;  %550 = vmatpush3.msra.mxu1 %v35_v11 }
  0x19   :  { %551 = vmatprep.subr.mxu1 %v34_v12 }
  0x1a   :  { %552 = vmatpush3.msra.mxu1 %v34_v12 }
  0x1b   :  { %504 = vmatpush3.xpose.msra.mxu0 %v39_v7  ;;  %553 = vmatprep.subr.mxu1 %v33_v13 }
  0x1c   :  { %505 = vmatprep.subr.mxu0 %v38_v8  ;;  %554 = vmatpush3.msra.mxu1 %v33_v13 }
  0x1d   :  { %555 = vmatprep.subr.mxu1 %v32_v14 }
  0x1e   :  { %556 = vmatpush3.msra.mxu1 %v32_v14 }
  0x1f   :  { %506 = vmatpush3.xpose.msra.mxu0 %v38_v8  ;;  %557 = vmatprep.subr.mxu1 %v31_v15 }
  0x20   :  { %507 = vmatprep.subr.mxu0 %v37_v9  ;;  %558 = vmatpush3.msra.mxu1 %v31_v15 }
  0x21   :  { %559 = vmatprep.subr.mxu1 %v30_v16 }
  0x22   :  { %560 = vmatpush3.msra.mxu1 %v30_v16 }
  0x23   :  { %508 = vmatpush3.xpose.msra.mxu0 %v37_v9 }
  0x24   :  { %509 = vmatprep.subr.mxu0 %v36_v10 }
  0x27   :  { %510 = vmatpush3.xpose.msra.mxu0 %v36_v10 }
  0x28   :  { %511 = vmatprep.subr.mxu0 %v35_v11 }
  0x2b   :  { %512 = vmatpush3.xpose.msra.mxu0 %v35_v11 }
  0x2c   :  { %513 = vmatprep.subr.mxu0 %v34_v12 }
  0x2f   :  { %514 = vmatpush3.xpose.msra.mxu0 %v34_v12 }
  0x30   :  { %515 = vmatprep.subr.mxu0 %v33_v13 }
  0x33   :  { %516 = vmatpush3.xpose.msra.mxu0 %v33_v13 }
  0x34   :  { %517 = vmatprep.subr.mxu0 %v32_v14 }
  0x37   :  { %518 = vmatpush3.xpose.msra.mxu0 %v32_v14 }
  0x38   :  { %519 = vmatprep.subr.mxu0 %v31_v15 }
  0x3b   :  { %520 = vmatpush3.xpose.msra.mxu0 %v31_v15 }
  0x3c   :  { %521 = vmatprep.subr.mxu0 %v30_v16 }
  0x3f   :  { %522 = vmatpush3.xpose.msra.mxu0 %v30_v16 }
  0x42   :  { %524 = vmatmul.mubr.f32.vlgmr.msra.gmra.mxu0 %v712_v17 }
  0x43   :  { %526 = vmatprep.mubr.f32.mxu0 %v717_v18 }
  0x46   :  { %527 = vmatmul.mubr.f32.gmra.mxu0 %v724_v19 }
 0x102   :  { %v525_v20 = vpop.f32.mrf.mxu0 }
 0x103   :  { %v133_v25 = vmul.f32 2.0, %v525_v20 }
 0x104   :  { %v112_v21 = vpop.f32.mrf.mxu0 }
 0x105   :  { %v132_v22 = vmul.f32 2.0, %v112_v21  ;;  %v143_v30 = vsub.f32 %v442_v24, %v133_v25 }
 0x106   :  { %v528_v23 = vpop.f32.mrf.mxu0 }
 0x107   :  { %v142_v26 = vsub.f32 %v442_v24, %v132_v22  ;;  %v135_v29 = vmul.f32 2.0, %v528_v23  ;;  %v622_v22 = vmov 1.0  }
 0x108   :  { %v122_v27 = vpop.f32.mrf.mxu0 }
 0x109   :  { %v134_v28 = vmul.f32 2.0, %v122_v27  ;;  %148 = vmin.xlane.f32.xlu0 %v142_v26  ;;  %v145_v32 = vsub.f32 %v442_v24, %v135_v29 }
 0x10b   :  { %v144_v31 = vsub.f32 %v442_v24, %v134_v28 }
 0x10d   :  { %150 = vmin.xlane.f32.xlu0 %v143_v30  ;;  %152 = vmin.xlane.f32.xlu1 %v144_v31 }
 0x111   :  { %154 = vmin.xlane.f32.xlu1 %v145_v32 }
 0x192   :  { %v149_v35 = vpop.xlane.xlu0 %148 }
 0x193   :  { %vm156_vm0 = vcmp.eq.f32.partialorder %v142_v26, %v149_v35 }
 0x194   :  { %v160_v36 = vsel %vm156_vm0, %v730_v34, 128 }
 0x195   :  { %v165_v37 = vshra.s32 %v160_v36, 16  ;;  %v164_v51 = vand.u32 65535, %v160_v36 }
 0x196   :  { %v151_v38 = vpop.xlane.xlu0 %150  ;;  %v153_v39 = vpop.xlane.xlu1 %152 }
 0x197   :  { %vm157_vm1 = vcmp.eq.f32.partialorder %v143_v30, %v151_v38  ;;  %vm158_vm2 = vcmp.eq.f32.partialorder %v144_v31, %v153_v39  ;;  %v167_v40 = vcvt.s32.f32 %v165_v37  ;;  %v166_v55 = vcvt.s32.f32 %v164_v51 }
 0x198   :  { %v161_v41 = vsel %vm157_vm1, %v730_v34, 128  ;;  %v162_v42 = vsel %vm158_vm2, %v730_v34, 128 }
 0x199   :  { %168 = vmin.xlane.f32.xlu0 %v167_v40  ;;  %v179_v43 = vshra.s32 %v161_v41, 16  ;;  %v193_v44 = vshra.s32 %v162_v42, 16  ;;  %v178_v52 = vand.u32 65535, %v161_v41  ;;  %v192_v53 = vand.u32 65535, %v162_v42  ;;  %v373_v42 = vld [vmem:[#allocation3] sm:$0x1] }
 0x19a   :  { %v155_v45 = vpop.xlane.xlu1 %154 }
 0x19b   :  { %vm159_vm3 = vcmp.eq.f32.partialorder %v145_v32, %v155_v45  ;;  %v181_v46 = vcvt.s32.f32 %v179_v43  ;;  %v195_v47 = vcvt.s32.f32 %v193_v44  ;;  %v194_v60 = vcvt.s32.f32 %v192_v53 }
 0x19c   :  { %v163_v48 = vsel %vm159_vm3, %v730_v34, 128  ;;  %v180_v61 = vcvt.s32.f32 %v178_v52 }
 0x19d   :  { %182 = vmin.xlane.f32.xlu1 %v181_v46  ;;  %196 = vmin.xlane.f32.xlu0 %v195_v47  ;;  %v207_v49 = vshra.s32 %v163_v48, 16  ;;  %v206_v57 = vand.u32 65535, %v163_v48 }
 0x19f   :  { %v209_v50 = vcvt.s32.f32 %v207_v49  ;;  %v208_v1 = vcvt.s32.f32 %v206_v57 }
 0x1a1   :  { %210 = vmin.xlane.f32.xlu1 %v209_v50 }
 0x222   :  { %v169_v54 = vpop.xlane.xlu0 %168 }
 0x223   :  { %vm170_vm4 = vcmp.eq.f32.partialorder %v167_v40, %v169_v54  ;;  %v175_v5 = vcvt.f32.s32 %v169_v54 }
 0x224   :  { %v171_v56 = vsel %vm170_vm4, %v166_v55, inf }
 0x225   :  { %172 = vmin.xlane.f32.xlu0 %v171_v56  ;;  %v176_v9 = vshll.u32 %v175_v5, 16 }
 0x226   :  { %v197_v58 = vpop.xlane.xlu0 %196  ;;  %v183_v59 = vpop.xlane.xlu1 %182 }
 0x227   :  { %vm198_vm5 = vcmp.eq.f32.partialorder %v195_v47, %v197_v58  ;;  %vm184_vm6 = vcmp.eq.f32.partialorder %v181_v46, %v183_v59  ;;  %v203_v6 = vcvt.f32.s32 %v197_v58  ;;  %v189_v7 = vcvt.f32.s32 %v183_v59 }
 0x228   :  { %v199_v62 = vsel %vm198_vm5, %v194_v60, inf  ;;  %v185_v63 = vsel %vm184_vm6, %v180_v61, inf }
 0x229   :  { %200 = vmin.xlane.f32.xlu0 %v199_v62  ;;  %186 = vmin.xlane.f32.xlu1 %v185_v63  ;;  %v204_v12 = vshll.u32 %v203_v6, 16  ;;  %v190_v13 = vshll.u32 %v189_v7, 16 }
 0x22a   :  { %v211_v0 = vpop.xlane.xlu1 %210 }
 0x22b   :  { %vm212_vm7 = vcmp.eq.f32.partialorder %v209_v50, %v211_v0  ;;  %v217_v16 = vcvt.f32.s32 %v211_v0 }
 0x22c   :  { %v213_v2 = vsel %vm212_vm7, %v208_v1, inf }
 0x22d   :  { %214 = vmin.xlane.f32.xlu1 %v213_v2  ;;  %v218_v26 = vshll.u32 %v217_v16, 16 }
 0x2ae   :  { %v173_v8 = vpop.xlane.xlu0 %172 }
 0x2af   :  { %v174_v10 = vcvt.f32.s32 %v173_v8 }
 0x2b1   :  { %v177_v11 = vadd.s32 %v176_v9, %v174_v10 }
 0x2b2   :  { %v201_v14 = vpop.xlane.xlu0 %200  ;;  %v187_v15 = vpop.xlane.xlu1 %186 }
 0x2b3   :  { %v202_v20 = vcvt.f32.s32 %v201_v14  ;;  %v188_v21 = vcvt.f32.s32 %v187_v15  ;;  %vm220_vm8 = vcmp.eq.s32.totalorder %v730_v34, %v177_v11 }
 0x2b4   :  { %561 = vmatprep.mubr.msk.f32.mxu1 %vm220_vm8, %v622_v22  ;;  %v443_v28 = vsel %vm220_vm8, 1.0, %v621_v4 }
 0x2b5   :  { %v205_v23 = vadd.s32 %v204_v12, %v202_v20  ;;  %v191_v24 = vadd.s32 %v190_v13, %v188_v21 }
 0x2b6   :  { %v215_v25 = vpop.xlane.xlu1 %214 }
 0x2b7   :  { %vm221_vm9 = vcmp.eq.s32.totalorder %v730_v34, %v191_v24  ;;  %v216_v27 = vcvt.f32.s32 %v215_v25  ;;  %vm222_vm10 = vcmp.eq.s32.totalorder %v730_v34, %v205_v23 }
 0x2b8   :  { %v444_v29 = vsel %vm221_vm9, 1.0, %v621_v4  ;;  %562 = vmatmul.mubr.msk.f32.vlgmr.msra.gmra.mxu1 %vm221_vm9, %v622_v22  ;;  %v445_v32 = vsel %vm222_vm10, 1.0, %v621_v4 }
 0x2b9   :  { %v378_v30 = vadd.f32 %v444_v29, %v443_v28  ;;  %v219_v31 = vadd.s32 %v218_v26, %v216_v27  ;;  %564 = vmatprep.mubr.msk.f32.mxu1 %vm222_vm10, %v622_v22 }
 0x2bb   :  { %v379_v33 = vadd.f32 %v445_v32, %v378_v30  ;;  %vm223_vm11 = vcmp.eq.s32.totalorder %v730_v34, %v219_v31 }
 0x2bc   :  { %v446_v35 = vsel %vm223_vm11, 1.0, %v621_v4  ;;  %565 = vmatmul.mubr.msk.f32.gmra.mxu1 %vm223_vm11, %v622_v22 }
 0x2bd   :  { %v380_v36 = vadd.f32 %v446_v35, %v379_v33 }
 0x2bf   :  { %v381_v37 = vrot.slane %v380_v36, 4 }
 0x2c1   :  { %v382_v38 = vadd.f32 %v381_v37, %v380_v36 }
 0x2c3   :  { %v383_v39 = vrot.slane %v382_v38, 2 }
 0x2c5   :  { %v384_v40 = vadd.f32 %v383_v39, %v382_v38 }
 0x2c7   :  { %v385_v41 = vrot.slane %v384_v40, 1 }
 0x2c9   :  { %v386_v43 = vadd.f32 %v385_v41, %v384_v40 }
 0x2cb   :  { %v387_v44 = vadd.f32 %v386_v43, %v373_v42 }
 0x2cd   :  { %388 = vst [vmem:[#allocation3] sm:$0x1] %v387_v44 }
 0x2d4   :  { %v396_v45 = vld [vmem:[#allocation3] sm:$0x1] }
 0x2d5   :  { %v397_v46 = vmul.f32 0.03125, %v396_v45 }
 0x2d7   :  { %v398_v47 = vadd.f32 1e-10, %v397_v46 }
 0x2d9   :  { %573 = vlog2.f32 %v398_v47 }
 0x2e6   :  { %v574_v48 = vpop.eup %573 }
 0x2e7   :  { %v400_v49 = vmul.f32 0.6931472, %v574_v48 }
 0x2e9   :  { %v401_v34 = vmul.f32 %v400_v49, %v397_v46 }
 0x2eb   :  { %v403_v50 = vsel %vm402_vm12, %v401_v34, 0.0 }
 0x2ec   :  { %404 = vadd.xlane.f32.xlu1 %v403_v50 }
 0x375   :  { %v405_v51 = vpop.xlane.xlu1 %404 }
 0x376   :  { %v406_v52 = vsub.f32 0.0, %v405_v51 }
 0x378   :  { %v407_v53 = vmul.f32 1.442695, %v406_v52  ;;  %v563_v54 = vpop.f32.mrf.mxu1 }
 0x379   :  { %318 = vst [vmem:[%s769_s3 + $0x8] sm:$0xff] %v563_v54  ;;  %v345_v56 = vsub.f32 %v563_v54, %v712_v17 }
 0x37a   :  { %575 = vpow2.f32 %v407_v53  ;;  %v298_v55 = vpop.f32.mrf.mxu1 }
 0x37b   :  { %317 = vst [vmem:[%s769_s3] sm:$0xff] %v298_v55  ;;  %v344_v57 = vsub.f32 %v298_v55, %v667_v3  ;;  %v354_v61 = vmul.f32 %v345_v56, %v345_v56 }
 0x37c   :  { %v566_v58 = vpop.f32.mrf.mxu1 }
 0x37d   :  { %v353_v59 = vmul.f32 %v344_v57, %v344_v57  ;;  %320 = vst [vmem:[%s769_s3 + $0x18] sm:$0xff] %v566_v58  ;;  %v347_v62 = vsub.f32 %v566_v58, %v724_v19 }
 0x37e   :  { %v308_v60 = vpop.f32.mrf.mxu1 }
 0x37f   :  { %319 = vst [vmem:[%s769_s3 + $0x10] sm:$0xff] %v308_v60  ;;  %v346_v17 = vsub.f32 %v308_v60, %v717_v18  ;;  %v357_v63 = vadd.f32 %v354_v61, %v353_v59  ;;  %v356_v1 = vmul.f32 %v347_v62, %v347_v62 }
 0x381   :  { %v355_v0 = vmul.f32 %v346_v17, %v346_v17 }
 0x383   :  { %v358_v3 = vadd.f32 %v357_v63, %v355_v0 }
 0x385   :  { %v359_v2 = vadd.f32 %v358_v3, %v356_v1 }
 0x387   :  { %v576_v4 = vpop.eup %575  ;;  %360 = vadd.xlane.f32.xlu0 %v359_v2 }
 0x388   :  { %409 = vst.msk [vmem:[#allocation6] sm:$0x1] %vm23_vm13, %v576_v4 }
 0x389   :  { %588 = shalt.err (!%p585_p4)
}
 0x38a   :  { %431 = dma.vmem_to_hbm [thread:$0]  %s429_s16, 16, %s771_s5, [#allocation7]   ;;  %v352_v10 = vld [vmem:[#allocation2] sm:$0x1] }
 0x38b   :  { %s624_s21 = smov [#allocation4]  }
 0x38c   :  { %s418_s22 = sshll.u32 %s624_s21, 4  ;;  %s419_s22 = int_to_ptr.vmem [resolvable:$true] %s418_s22 }
 0x38d   :  { %s597_s5 = scalar_lea.vmem %s419_s22, 16  ;;  %s601_s23 = scalar_lea.vmem %s419_s22, 32 }
 0x38e   :  { %p598_p5 = scmp.ne.s32.totalorder %s419_s22, %s597_s5  ;;  %p602_p6 = scmp.lt.s32.totalorder %s419_s22, %s419_s22 }
 0x38f   :  { %p603_p7 = scmp.lt.s32.totalorder %s601_s23, %s597_s5 }
 0x391   :  { %p604_p8 = por %p603_p7, %p602_p6 }
 0x393   :  { %p605_p9 = pnand %p604_p8, %p598_p5 }
 0x410   :  { %v361_v18 = vpop.xlane.xlu0 %360 }
 0x411   :  { %v362_v19 = vrot.slane %v361_v18, 4 }
 0x413   :  { %v363_v5 = vadd.f32 %v362_v19, %v361_v18 }
 0x415   :  { %v364_v6 = vrot.slane %v363_v5, 2 }
 0x417   :  { %v365_v7 = vadd.f32 %v364_v6, %v363_v5 }
 0x419   :  { %v366_v8 = vrot.slane %v365_v7, 1 }
 0x41b   :  { %v367_v9 = vadd.f32 %v366_v8, %v365_v7 }
 0x41d   :  { %567 = vpush %v367_v9 }
 0x44e   :  { %s568_s20 = spop %567 }
 0x44f   :  { %v369_v11 = vstv %s568_s20 }
 0x450   :  { %v370_v12 = vadd.f32 %v369_v11, %v352_v10 }
 0x452   :  { %372 = vst.msk [vmem:[#allocation2] sm:$0x1] %vm23_vm13, %v370_v12 }
 0x459   :  { %v392_v13 = vld [vmem:[#allocation2] sm:$0x1] }
 0x45a   :  { %v393_v14 = vmul.f32 1.25, %v392_v13 }
 0x45c   :  { %v394_v15 = vmul.f32 0.00390625, %v393_v14 }
 0x45e   :  { %395 = vst.msk [vmem:[#allocation4] sm:$0x1] %vm23_vm13, %v394_v15 }
 0x45f   :  { %608 = shalt.err (!%p605_p9)
}
 0x460   :  { %421 = dma.vmem_to_hbm [thread:$0]  %s419_s22, 16, %s770_s4, [#allocation5]  }
 0x461   :  { %617 = dma.done.wait [#allocation5], 16  }
 0x462   :  { %618 = vsyncadd [#allocation5], 4294967280 }
 0x463   :  { %619 = dma.done.wait [#allocation7], 16  }
 0x464   :  { %620 = vsyncadd [#allocation7], 4294967280 }
 0x465   :  { %440 = vsyncpa [#allocation5], 1 }
 0x466   :  { %441 = vsyncpa [#allocation7], 1 }

// kernel: _lambda_.30
= control target key start
LH: loop header
LB: loop body
LE: loop exit
PB: predicated region body
PF: predicated region fallthrough
CT: control target
= control target key end

     0   :  { %s641_s1 = inlined_call_operand.vmem [shape: bf16[384,128], index: 1, kind: input, shape index: {}]   ;;  %s642_s0 = inlined_call_operand.vmem [shape: bf16[32,384], index: 0, kind: input, shape index: {}]   ;;  %s643_s2 = inlined_call_operand.vmem [shape: f32[1,128], index: 2, kind: input, shape index: {}]   ;;  %s644_s3 = inlined_call_operand.vmem [shape: f32[32,128], index: 3, kind: output, shape index: {}]  }
   0x1   :  { %v484_v0 = vld [vmem:[%s641_s1 + $0x78] sm:$0xff]   ;;  %v487_v3 = vld [vmem:[%s641_s1 + $0x70] sm:$0xff]   ;;  %v490_v6 = vld [vmem:[%s641_s1 + $0x68] sm:$0xff]  }
   0x2   :  { %v485_v1 = vld [vmem:[%s641_s1 + $0x38] sm:$0xff]   ;;  %426 = vmatprep.subr.bf16.mxu0 %v484_v0  ;;  %v488_v4 = vld [vmem:[%s641_s1 + $0x30] sm:$0xff]   ;;  %v491_v7 = vld [vmem:[%s641_s1 + $0x28] sm:$0xff]  }
   0x3   :  { %v486_v2 = vld [vmem:[%s641_s1 + $0xb8] sm:$0xff]   ;;  %427 = vmatpush3.bf16.msra.mxu0 %v485_v1  ;;  %v489_v5 = vld [vmem:[%s641_s1 + $0xb0] sm:$0xff]   ;;  %v492_v8 = vld [vmem:[%s641_s1 + $0xa8] sm:$0xff]  }
   0x4   :  { %464 = vmatprep.subr.bf16.mxu1 %v486_v2  ;;  %428 = vmatprep.subr.bf16.mxu0 %v487_v3  ;;  %v493_v9 = vld [vmem:[%s641_s1 + $0x60] sm:$0xff]   ;;  %v496_v12 = vld [vmem:[%s641_s1 + $0x58] sm:$0xff]   ;;  %v499_v15 = vld [vmem:[%s641_s1 + $0x50] sm:$0xff]  }
   0x5   :  { %465 = vmatpush3.bf16.msra.mxu1 %v486_v2  ;;  %v494_v10 = vld [vmem:[%s641_s1 + $0x20] sm:$0xff]   ;;  %v498_v13 = vld [vmem:[%s641_s1 + $0x98] sm:$0xff]   ;;  %v501_v16 = vld [vmem:[%s641_s1 + $0x90] sm:$0xff]  }
   0x6   :  { %466 = vmatprep.subr.bf16.mxu1 %v489_v5  ;;  %v495_v11 = vld [vmem:[%s641_s1 + $0xa0] sm:$0xff]   ;;  %v497_v14 = vld [vmem:[%s641_s1 + $0x18] sm:$0xff]   ;;  %v500_v17 = vld [vmem:[%s641_s1 + $0x10] sm:$0xff]  }
   0x7   :  { %429 = vmatpush3.bf16.msra.mxu0 %v488_v4  ;;  %v502_v18 = vld [vmem:[%s641_s1 + $0x48] sm:$0xff]   ;;  %v505_v21 = vld [vmem:[%s641_s1 + $0x40] sm:$0xff]  }
   0x8   :  { %430 = vmatprep.subr.bf16.mxu0 %v490_v6  ;;  %v503_v19 = vld [vmem:[%s641_s1 + $0x8] sm:$0xff]   ;;  %v507_v22 = vld [vmem:[%s641_s1 + $0x80] sm:$0xff]  }
   0x9   :  { %467 = vmatpush3.bf16.msra.mxu1 %v489_v5  ;;  %v504_v20 = vld [vmem:[%s641_s1 + $0x88] sm:$0xff]   ;;  %v510_v23 = vld [vmem:[%s642_s0 + $0x4] ss:$12 sps:$4 sm:$0xff]   ;;  %v425_v36 = vld [vmem:[%s643_s2] ss:$0 sm:$0xff] }
   0xa   :  { %468 = vmatprep.subr.bf16.mxu1 %v492_v8  ;;  %v511_v24 = vld [vmem:[%s642_s0 + $0x8] ss:$12 sps:$4 sm:$0xff]   ;;  %v506_v25 = vld [vmem:[%s641_s1] sm:$0xff]   ;;  %291 = vmatprep.mubr.bf16.mxu0 %v510_v23 }
   0xb   :  { %431 = vmatpush3.bf16.msra.mxu0 %v491_v7  ;;  %480 = vmatprep.mubr.bf16.mxu1 %v511_v24  ;;  %v508_v26 = vld [vmem:[%s642_s0] ss:$12 sps:$4 sm:$0xff]   ;;  %v513_v27 = vld [vmem:[%s642_s0 + $0x1c] ss:$12 sps:$4 sm:$0xff]   ;;  %v515_v29 = vld [vmem:[%s642_s0 + $0x18] ss:$12 sps:$4 sm:$0xff]  }
   0xc   :  { %432 = vmatprep.subr.bf16.mxu0 %v493_v9  ;;  %v512_v28 = vld [vmem:[%s642_s0 + $0x20] ss:$12 sps:$4 sm:$0xff]  }
   0xd   :  { %469 = vmatpush3.bf16.msra.mxu1 %v492_v8 }
   0xe   :  { %470 = vmatprep.subr.bf16.mxu1 %v495_v11 }
   0xf   :  { %433 = vmatpush3.bf16.msra.mxu0 %v494_v10 }
  0x10   :  { %434 = vmatprep.subr.bf16.mxu0 %v496_v12 }
  0x11   :  { %471 = vmatpush3.bf16.msra.mxu1 %v495_v11 }
  0x12   :  { %472 = vmatprep.subr.bf16.mxu1 %v498_v13 }
  0x13   :  { %435 = vmatpush3.bf16.msra.mxu0 %v497_v14 }
  0x14   :  { %436 = vmatprep.subr.bf16.mxu0 %v499_v15 }
  0x15   :  { %473 = vmatpush3.bf16.msra.mxu1 %v498_v13 }
  0x16   :  { %474 = vmatprep.subr.bf16.mxu1 %v501_v16 }
  0x17   :  { %437 = vmatpush3.bf16.msra.mxu0 %v500_v17 }
  0x18   :  { %438 = vmatprep.subr.bf16.mxu0 %v502_v18 }
  0x19   :  { %475 = vmatpush3.bf16.msra.mxu1 %v501_v16 }
  0x1a   :  { %476 = vmatprep.subr.bf16.mxu1 %v504_v20 }
  0x1b   :  { %439 = vmatpush3.bf16.msra.mxu0 %v503_v19 }
  0x1c   :  { %440 = vmatprep.subr.bf16.mxu0 %v505_v21 }
  0x1d   :  { %477 = vmatpush3.bf16.msra.mxu1 %v504_v20 }
  0x1e   :  { %478 = vmatprep.subr.bf16.mxu1 %v507_v22 }
  0x1f   :  { %441 = vmatpush3.bf16.msra.mxu0 %v506_v25 }
  0x21   :  { %479 = vmatpush3.bf16.msra.mxu1 %v507_v22 }
  0x22   :  { %292 = vmatmul.mubr.bf16.vlgmr.msra.gmra.mxu0 %v508_v26 }
  0x23   :  { %299 = vmatprep.mubr.bf16.mxu0 %v513_v27 }
  0x24   :  { %481 = vmatmul.mubr.bf16.vlgmr.msra.gmra.mxu1 %v512_v28 }
  0x2a   :  { %300 = vmatmul.mubr.bf16.gmra.mxu0 %v515_v29 }
  0xe2   :  { %v442_v30 = vpop.f32.mrf.mxu0 }
  0xe4   :  { %v443_v31 = vpop.f32.mrf.mxu0  ;;  %v482_v32 = vpop.f32.mrf.mxu1 }
  0xe5   :  { %v444_v33 = vadd.f32 %v443_v31, %v442_v30 }
  0xe6   :  { %v445_v34 = vpop.f32.mrf.mxu0  ;;  %v342_v35 = vpop.f32.mrf.mxu1 }
  0xe7   :  { %v343_v37 = vadd.f32 %v444_v33, %v342_v35 }
  0xe8   :  { %v446_v38 = vpop.f32.mrf.mxu0  ;;  %v483_v39 = vpop.f32.mrf.mxu1 }
  0xe9   :  { %v379_v40 = vadd.f32 %v425_v36, %v343_v37  ;;  %v447_v41 = vadd.f32 %v446_v38, %v445_v34 }
  0xea   :  { %v448_v42 = vpop.f32.mrf.mxu0  ;;  %v345_v43 = vpop.f32.mrf.mxu1 }
  0xeb   :  { %v383_v44 = vmax.f32 %v379_v40, 0.0  ;;  %v346_v45 = vadd.f32 %v447_v41, %v345_v43 }
  0xec   :  { %v449_v46 = vpop.f32.mrf.mxu0 }
  0xed   :  { %387 = vst [vmem:[%s644_s3] sm:$0xff] %v383_v44  ;;  %v380_v47 = vadd.f32 %v425_v36, %v346_v45  ;;  %v450_v48 = vadd.f32 %v449_v46, %v448_v42 }
  0xee   :  { %v451_v49 = vpop.f32.mrf.mxu0 }
  0xef   :  { %v384_v50 = vmax.f32 %v380_v47, 0.0  ;;  %v351_v51 = vadd.f32 %v482_v32, %v450_v48 }
  0xf0   :  { %v452_v52 = vpop.f32.mrf.mxu0 }
  0xf1   :  { %388 = vst [vmem:[%s644_s3 + $0x8] sm:$0xff] %v384_v50  ;;  %v381_v53 = vadd.f32 %v425_v36, %v351_v51  ;;  %v453_v54 = vadd.f32 %v452_v52, %v451_v49 }
  0xf3   :  { %v385_v55 = vmax.f32 %v381_v53, 0.0  ;;  %v354_v56 = vadd.f32 %v483_v39, %v453_v54 }
  0xf5   :  { %389 = vst [vmem:[%s644_s3 + $0x10] sm:$0xff] %v385_v55  ;;  %v382_v57 = vadd.f32 %v425_v36, %v354_v56 }
  0xf7   :  { %v386_v58 = vmax.f32 %v382_v57, 0.0 }
  0xf9   :  { %390 = vst [vmem:[%s644_s3 + $0x18] sm:$0xff] %v386_v58 }

// kernel: _lambda_.31
= control target key start
LH: loop header
LB: loop body
LE: loop exit
PB: predicated region body
PF: predicated region fallthrough
CT: control target
= control target key end

     0   :  { %s804_s1 = inlined_call_operand.vmem [shape: bf16[256,128], index: 1, kind: input, shape index: {}]   ;;  %s805_s0 = inlined_call_operand.vmem [shape: bf16[128,256], index: 0, kind: input, shape index: {}]   ;;  %s806_s2 = inlined_call_operand.vmem [shape: f32[1,128], index: 2, kind: input, shape index: {}]   ;;  %s807_s3 = inlined_call_operand.vmem [shape: f32[128,128], index: 3, kind: output, shape index: {}]  }
   0x1   :  { %v579_v0 = vld [vmem:[%s804_s1 + $0x78] sm:$0xff]   ;;  %v581_v2 = vld [vmem:[%s804_s1 + $0x70] sm:$0xff]   ;;  %v583_v4 = vld [vmem:[%s804_s1 + $0x68] sm:$0xff]  }
   0x2   :  { %v580_v1 = vld [vmem:[%s804_s1 + $0x38] sm:$0xff]   ;;  %499 = vmatprep.subr.bf16.mxu0 %v579_v0  ;;  %563 = vmatprep.subr.bf16.mxu1 %v579_v0  ;;  %v582_v3 = vld [vmem:[%s804_s1 + $0x30] sm:$0xff]   ;;  %v584_v5 = vld [vmem:[%s804_s1 + $0x28] sm:$0xff]  }
   0x3   :  { %500 = vmatpush3.bf16.msra.mxu0 %v580_v1  ;;  %571 = vmatpush3.bf16.msra.mxu1 %v580_v1  ;;  %v585_v6 = vld [vmem:[%s804_s1 + $0x60] sm:$0xff]   ;;  %v587_v8 = vld [vmem:[%s804_s1 + $0x58] sm:$0xff]   ;;  %v589_v10 = vld [vmem:[%s804_s1 + $0x50] sm:$0xff]  }
   0x4   :  { %501 = vmatprep.subr.bf16.mxu0 %v581_v2  ;;  %564 = vmatprep.subr.bf16.mxu1 %v581_v2  ;;  %v586_v7 = vld [vmem:[%s804_s1 + $0x20] sm:$0xff]   ;;  %v588_v9 = vld [vmem:[%s804_s1 + $0x18] sm:$0xff]   ;;  %v590_v13 = vld [vmem:[%s804_s1 + $0x10] sm:$0xff]  }
   0x5   :  { %v597_v11 = vld [vmem:[%s805_s0 + $0x4] ss:$8 sps:$4 sm:$0xff]   ;;  %v595_v18 = vld [vmem:[%s805_s0] ss:$8 sps:$4 sm:$0xff]   ;;  %v601_v20 = vld [vmem:[%s805_s0 + $0x14] ss:$8 sps:$4 sm:$0xff]  }
   0x6   :  { %v600_v12 = vld [vmem:[%s805_s0 + $0x44] ss:$8 sps:$4 sm:$0xff]   ;;  %307 = vmatprep.mubr.bf16.mxu0 %v597_v11  ;;  %v598_v19 = vld [vmem:[%s805_s0 + $0x40] ss:$8 sps:$4 sm:$0xff]   ;;  %v603_v21 = vld [vmem:[%s805_s0 + $0x54] ss:$8 sps:$4 sm:$0xff]  }
   0x7   :  { %502 = vmatpush3.bf16.msra.mxu0 %v582_v3  ;;  %572 = vmatpush3.bf16.msra.mxu1 %v582_v3  ;;  %v591_v14 = vld [vmem:[%s804_s1 + $0x48] sm:$0xff]   ;;  %v593_v16 = vld [vmem:[%s804_s1 + $0x40] sm:$0xff]   ;;  %v605_v22 = vld [vmem:[%s805_s0 + $0x10] ss:$8 sps:$4 sm:$0xff]  }
   0x8   :  { %503 = vmatprep.subr.bf16.mxu0 %v583_v4  ;;  %565 = vmatprep.subr.bf16.mxu1 %v583_v4  ;;  %v592_v15 = vld [vmem:[%s804_s1 + $0x8] sm:$0xff]   ;;  %v594_v17 = vld [vmem:[%s804_s1] sm:$0xff]   ;;  %v606_v23 = vld [vmem:[%s805_s0 + $0x50] ss:$8 sps:$4 sm:$0xff]  }
   0x9   :  { %339 = vmatprep.mubr.bf16.mxu1 %v600_v12  ;;  %v607_v24 = vld [vmem:[%s805_s0 + $0x24] ss:$8 sps:$4 sm:$0xff]   ;;  %v611_v26 = vld [vmem:[%s805_s0 + $0x20] ss:$8 sps:$4 sm:$0xff]   ;;  %v613_v28 = vld [vmem:[%s805_s0 + $0x34] ss:$8 sps:$4 sm:$0xff]  }
   0xa   :  { %v609_v25 = vld [vmem:[%s805_s0 + $0x64] ss:$8 sps:$4 sm:$0xff]   ;;  %v612_v27 = vld [vmem:[%s805_s0 + $0x60] ss:$8 sps:$4 sm:$0xff]   ;;  %v615_v29 = vld [vmem:[%s805_s0 + $0x74] ss:$8 sps:$4 sm:$0xff]  }
   0xb   :  { %504 = vmatpush3.bf16.msra.mxu0 %v584_v5  ;;  %573 = vmatpush3.bf16.msra.mxu1 %v584_v5  ;;  %v617_v30 = vld [vmem:[%s805_s0 + $0x30] ss:$8 sps:$4 sm:$0xff]   ;;  %v738_v35 = vld [vmem:[%s806_s2] ss:$0 sm:$0xff] }
   0xc   :  { %505 = vmatprep.subr.bf16.mxu0 %v585_v6  ;;  %566 = vmatprep.subr.bf16.mxu1 %v585_v6  ;;  %v618_v31 = vld [vmem:[%s805_s0 + $0x70] ss:$8 sps:$4 sm:$0xff]  }
   0xf   :  { %506 = vmatpush3.bf16.msra.mxu0 %v586_v7  ;;  %574 = vmatpush3.bf16.msra.mxu1 %v586_v7 }
  0x10   :  { %507 = vmatprep.subr.bf16.mxu0 %v587_v8  ;;  %567 = vmatprep.subr.bf16.mxu1 %v587_v8 }
  0x13   :  { %508 = vmatpush3.bf16.msra.mxu0 %v588_v9  ;;  %575 = vmatpush3.bf16.msra.mxu1 %v588_v9 }
  0x14   :  { %509 = vmatprep.subr.bf16.mxu0 %v589_v10  ;;  %568 = vmatprep.subr.bf16.mxu1 %v589_v10 }
  0x17   :  { %510 = vmatpush3.bf16.msra.mxu0 %v590_v13  ;;  %576 = vmatpush3.bf16.msra.mxu1 %v590_v13 }
  0x18   :  { %511 = vmatprep.subr.bf16.mxu0 %v591_v14  ;;  %569 = vmatprep.subr.bf16.mxu1 %v591_v14 }
  0x1b   :  { %512 = vmatpush3.bf16.msra.mxu0 %v592_v15  ;;  %577 = vmatpush3.bf16.msra.mxu1 %v592_v15 }
  0x1c   :  { %513 = vmatprep.subr.bf16.mxu0 %v593_v16  ;;  %570 = vmatprep.subr.bf16.mxu1 %v593_v16 }
  0x1f   :  { %514 = vmatpush3.bf16.msra.mxu0 %v594_v17  ;;  %578 = vmatpush3.bf16.msra.mxu1 %v594_v17 }
  0x22   :  { %308 = vmatmul.mubr.bf16.vlgmr.msra.gmra.mxu0 %v595_v18  ;;  %340 = vmatmul.mubr.bf16.vlgmr.msra.gmra.mxu1 %v598_v19 }
  0x23   :  { %315 = vmatprep.mubr.bf16.mxu0 %v601_v20  ;;  %347 = vmatprep.mubr.bf16.mxu1 %v603_v21 }
  0x2a   :  { %316 = vmatmul.mubr.bf16.gmra.mxu0 %v605_v22  ;;  %348 = vmatmul.mubr.bf16.gmra.mxu1 %v606_v23 }
  0x2b   :  { %323 = vmatprep.mubr.bf16.mxu0 %v607_v24  ;;  %355 = vmatprep.mubr.bf16.mxu1 %v609_v25 }
  0x32   :  { %324 = vmatmul.mubr.bf16.gmra.mxu0 %v611_v26  ;;  %356 = vmatmul.mubr.bf16.gmra.mxu1 %v612_v27 }
  0x33   :  { %331 = vmatprep.mubr.bf16.mxu0 %v613_v28  ;;  %363 = vmatprep.mubr.bf16.mxu1 %v615_v29 }
  0x3a   :  { %332 = vmatmul.mubr.bf16.gmra.mxu0 %v617_v30  ;;  %364 = vmatmul.mubr.bf16.gmra.mxu1 %v618_v31 }
  0xe2   :  { %v515_v32 = vpop.f32.mrf.mxu0  ;;  %v539_v33 = vpop.f32.mrf.mxu1 }
  0xe4   :  { %v516_v34 = vpop.f32.mrf.mxu0  ;;  %v540_v36 = vpop.f32.mrf.mxu1 }
  0xe5   :  { %v517_v37 = vadd.f32 %v516_v34, %v515_v32  ;;  %v541_v38 = vadd.f32 %v540_v36, %v539_v33 }
  0xe6   :  { %v518_v39 = vpop.f32.mrf.mxu0  ;;  %v542_v40 = vpop.f32.mrf.mxu1 }
  0xe7   :  { %v430_v41 = vadd.f32 %v517_v37, %v738_v35  ;;  %v438_v42 = vadd.f32 %v541_v38, %v738_v35 }
  0xe8   :  { %v519_v43 = vpop.f32.mrf.mxu0  ;;  %v543_v44 = vpop.f32.mrf.mxu1 }
  0xe9   :  { %446 = vst [vmem:[%s807_s3] sm:$0xff] %v430_v41  ;;  %454 = vst [vmem:[%s807_s3 + $0x40] sm:$0xff] %v438_v42  ;;  %v520_v45 = vadd.f32 %v519_v43, %v518_v39  ;;  %v544_v46 = vadd.f32 %v543_v44, %v542_v40 }
  0xea   :  { %v521_v47 = vpop.f32.mrf.mxu0  ;;  %v545_v48 = vpop.f32.mrf.mxu1 }
  0xeb   :  { %v431_v49 = vadd.f32 %v520_v45, %v738_v35  ;;  %v439_v50 = vadd.f32 %v544_v46, %v738_v35 }
  0xec   :  { %v522_v51 = vpop.f32.mrf.mxu0  ;;  %v546_v52 = vpop.f32.mrf.mxu1 }
  0xed   :  { %447 = vst [vmem:[%s807_s3 + $0x8] sm:$0xff] %v431_v49  ;;  %455 = vst [vmem:[%s807_s3 + $0x48] sm:$0xff] %v439_v50  ;;  %v523_v53 = vadd.f32 %v522_v51, %v521_v47  ;;  %v547_v54 = vadd.f32 %v546_v52, %v545_v48 }
  0xee   :  { %v524_v55 = vpop.f32.mrf.mxu0  ;;  %v548_v56 = vpop.f32.mrf.mxu1 }
  0xef   :  { %v432_v57 = vadd.f32 %v523_v53, %v738_v35  ;;  %v440_v58 = vadd.f32 %v547_v54, %v738_v35 }
  0xf0   :  { %v525_v59 = vpop.f32.mrf.mxu0  ;;  %v549_v60 = vpop.f32.mrf.mxu1 }
  0xf1   :  { %448 = vst [vmem:[%s807_s3 + $0x10] sm:$0xff] %v432_v57  ;;  %456 = vst [vmem:[%s807_s3 + $0x50] sm:$0xff] %v440_v58  ;;  %v526_v61 = vadd.f32 %v525_v59, %v524_v55  ;;  %v550_v62 = vadd.f32 %v549_v60, %v548_v56 }
  0xf2   :  { %v527_v63 = vpop.f32.mrf.mxu0  ;;  %v551_v0 = vpop.f32.mrf.mxu1 }
  0xf3   :  { %v433_v1 = vadd.f32 %v526_v61, %v738_v35  ;;  %v441_v2 = vadd.f32 %v550_v62, %v738_v35 }
  0xf4   :  { %v528_v3 = vpop.f32.mrf.mxu0  ;;  %v552_v4 = vpop.f32.mrf.mxu1 }
  0xf5   :  { %449 = vst [vmem:[%s807_s3 + $0x18] sm:$0xff] %v433_v1  ;;  %457 = vst [vmem:[%s807_s3 + $0x58] sm:$0xff] %v441_v2  ;;  %v529_v5 = vadd.f32 %v528_v3, %v527_v63  ;;  %v553_v6 = vadd.f32 %v552_v4, %v551_v0 }
  0xf6   :  { %v530_v7 = vpop.f32.mrf.mxu0  ;;  %v554_v8 = vpop.f32.mrf.mxu1 }
  0xf7   :  { %v434_v9 = vadd.f32 %v529_v5, %v738_v35  ;;  %v442_v10 = vadd.f32 %v553_v6, %v738_v35 }
  0xf8   :  { %v531_v11 = vpop.f32.mrf.mxu0  ;;  %v555_v12 = vpop.f32.mrf.mxu1 }
  0xf9   :  { %450 = vst [vmem:[%s807_s3 + $0x20] sm:$0xff] %v434_v9  ;;  %458 = vst [vmem:[%s807_s3 + $0x60] sm:$0xff] %v442_v10  ;;  %v532_v13 = vadd.f32 %v531_v11, %v530_v7  ;;  %v556_v14 = vadd.f32 %v555_v12, %v554_v8 }
  0xfa   :  { %v533_v15 = vpop.f32.mrf.mxu0  ;;  %v557_v16 = vpop.f32.mrf.mxu1 }
  0xfb   :  { %v435_v17 = vadd.f32 %v532_v13, %v738_v35  ;;  %v443_v18 = vadd.f32 %v556_v14, %v738_v35 }
  0xfc   :  { %v534_v19 = vpop.f32.mrf.mxu0  ;;  %v558_v20 = vpop.f32.mrf.mxu1 }
  0xfd   :  { %451 = vst [vmem:[%s807_s3 + $0x28] sm:$0xff] %v435_v17  ;;  %459 = vst [vmem:[%s807_s3 + $0x68] sm:$0xff] %v443_v18  ;;  %v535_v21 = vadd.f32 %v534_v19, %v533_v15  ;;  %v559_v22 = vadd.f32 %v558_v20, %v557_v16 }
  0xfe   :  { %v536_v23 = vpop.f32.mrf.mxu0  ;;  %v560_v24 = vpop.f32.mrf.mxu1 }
  0xff   :  { %v436_v25 = vadd.f32 %v535_v21, %v738_v35  ;;  %v444_v26 = vadd.f32 %v559_v22, %v738_v35 }
 0x100   :  { %v537_v27 = vpop.f32.mrf.mxu0  ;;  %v561_v28 = vpop.f32.mrf.mxu1 }
 0x101   :  { %452 = vst [vmem:[%s807_s3 + $0x30] sm:$0xff] %v436_v25  ;;  %460 = vst [vmem:[%s807_s3 + $0x70] sm:$0xff] %v444_v26  ;;  %v538_v29 = vadd.f32 %v537_v27, %v536_v23  ;;  %v562_v30 = vadd.f32 %v561_v28, %v560_v24 }
 0x103   :  { %v437_v31 = vadd.f32 %v538_v29, %v738_v35  ;;  %v445_v32 = vadd.f32 %v562_v30, %v738_v35 }
 0x105   :  { %453 = vst [vmem:[%s807_s3 + $0x38] sm:$0xff] %v437_v31  ;;  %461 = vst [vmem:[%s807_s3 + $0x78] sm:$0xff] %v445_v32 }

</bundles_post_ra>
